<compile_context>
chip_gen: v7x
topology: tpu7x:2x2x1
jax: 0.10.0
libtpu: 0.0.40
codegen_flags: <defaults>
</compile_context>

<pallas_src>
import jax
import jax.numpy as jnp
from jax.experimental import pallas as pl
from jax.experimental.pallas import tpu as pltpu


def _mlp_kernel(x_ref, w1_ref, b1_ref, w2_ref, b2_ref, o_ref):
    # Lane-dense layout: batch is the last (lane) dimension.
    #   x_ref : (IN,  TB)  activation tile
    #   w1_ref: (H,   IN)  fc1 weight, PyTorch (out, in) layout
    #   b1_ref: (H,   1)
    #   w2_ref: (OUT, H)   fc2 weight
    #   b2_ref: (OUT, 1)
    #   o_ref : (OUT, TB)
    x = x_ref[...].astype(jnp.float32)
    w1 = w1_ref[...].astype(jnp.float32)
    b1 = b1_ref[...].astype(jnp.float32)
    w2 = w2_ref[...].astype(jnp.float32)
    b2 = b2_ref[...].astype(jnp.float32)

    in_f = w1.shape[1]   # 2   (static Python ints -> loops unroll at trace time)
    hid = w2.shape[1]    # 10

    # fc1 + bias as VPU broadcast-FMAs: h[j, b] = b1[j] + sum_k w1[j, k] * x[k, b]
    h = b1 + w1[:, 0:1] * x[0:1, :]
    for k in range(1, in_f):
        h = h + w1[:, k:k + 1] * x[k:k + 1, :]
    h = jnp.maximum(h, 0.0)                       # ReLU, (H, TB)

    # fc2 + bias: y[i, b] = b2[i] + sum_k w2[i, k] * h[k, b]
    # Two independent partial sums -> shorter dependent-FMA chain.
    y = b2 + w2[:, 0:1] * h[0:1, :]
    if hid > 1:
        y_odd = w2[:, 1:2] * h[1:2, :]
        for k in range(2, hid):
            term = w2[:, k:k + 1] * h[k:k + 1, :]
            if k % 2 == 0:
                y = y + term
            else:
                y_odd = y_odd + term
        y = y + y_odd

    o_ref[...] = y.astype(o_ref.dtype)


def simple_nn_forward_feature_major(x_t, w1, b1, w2, b2, *, batch_tile=4096):
    """Lane-dense forward: x_t is (IN, B); returns (OUT, B) in x_t.dtype.

    Preferred entry point when the producer/consumer can handle feature-major
    activations (no transpose passes at all).  Parameters are in PyTorch
    nn.Linear layout: w1 (H, IN), b1 (H,), w2 (OUT, H), b2 (OUT,).
    """
    in_f, B = x_t.shape
    hid = w1.shape[0]
    out_f = w2.shape[0]
    assert w1.shape == (hid, in_f)
    assert w2.shape == (out_f, hid)

    LANE = 128
    # Batch tile: multiple of 128 lanes, capped by batch size and batch_tile.
    tb = min(int(batch_tile), LANE * pl.cdiv(B, LANE))
    tb = LANE * pl.cdiv(tb, LANE)
    num_tiles = pl.cdiv(B, tb)
    # v7x megacore: keep >=2 grid steps when possible so both TensorCores get
    # work under dimension_semantics=("parallel",).
    if num_tiles < 2 and tb > LANE:
        tb = LANE * pl.cdiv(tb // 2, LANE)
        num_tiles = pl.cdiv(B, tb)

    b1c = b1.reshape(hid, 1).astype(jnp.float32)
    b2c = b2.reshape(out_f, 1).astype(jnp.float32)

    act_bytes = x_t.dtype.itemsize
    flops = 2 * B * (in_f * hid + hid * out_f)
    bytes_accessed = (
        in_f * B * act_bytes                       # x read
        + out_f * B * act_bytes                    # out write
        + (w1.size + w2.size) * w1.dtype.itemsize  # resident weights
        + (hid + out_f) * 4                        # biases (f32)
    )

    return pl.pallas_call(
        _mlp_kernel,
        out_shape=jax.ShapeDtypeStruct((out_f, B), x_t.dtype),
        grid=(num_tiles,),
        in_specs=[
            # x: streamed per batch tile (boundary tile handled by Pallas).
            pl.BlockSpec((in_f, tb), lambda i: (0, i)),
            # weights / biases: resident across all grid steps.
            pl.BlockSpec((hid, in_f), lambda i: (0, 0)),
            pl.BlockSpec((hid, 1), lambda i: (0, 0)),
            pl.BlockSpec((out_f, hid), lambda i: (0, 0)),
            pl.BlockSpec((out_f, 1), lambda i: (0, 0)),
        ],
        out_specs=pl.BlockSpec((out_f, tb), lambda i: (0, i)),
        compiler_params=pltpu.CompilerParams(
            dimension_semantics=("parallel",)),
        cost_estimate=pl.CostEstimate(
            flops=flops, transcendentals=0, bytes_accessed=bytes_accessed),
    )(x_t, w1, b1c, w2, b2c)


def simple_nn_forward(x, w1, b1, w2, b2, *, batch_tile=4096, min_pallas_batch=2048):
    """relu(x @ w1.T + b1) @ w2.T + b2, parameters in PyTorch nn.Linear layout.

    x : (B, IN)  activations (f32 or bf16)
    Returns (B, OUT) in x.dtype.

    For B < min_pallas_batch this falls back to a single fused XLA op (Pallas
    dispatch + layout cost would dominate at tiny batch sizes).
    """
    B = x.shape[0]
    if B < min_pallas_batch:
        xf = x.astype(jnp.float32)
        h = jnp.maximum(xf @ w1.T.astype(jnp.float32) + b1[None, :], 0.0)
        y = h @ w2.T.astype(jnp.float32) + b2[None, :]
        return y.astype(x.dtype)

    # One transpose in, one transpose out (no zero-fill / padded-buffer write).
    # Callers that can produce (IN, B) directly should use
    # simple_nn_forward_feature_major and skip these two passes.
    out_t = simple_nn_forward_feature_major(
        x.T, w1, b1, w2, b2, batch_tile=batch_tile)
    return out_t.T


def init_params(key):
    """Deterministic init mimicking PyTorch nn.Linear default (U[-1/sqrt(fan_in), +])."""
    k1, k2, k3, k4 = jax.random.split(key, 4)
    bound1 = 1.0 / jnp.sqrt(2.0)
    w1 = jax.random.uniform(k1, (10, 2), jnp.float32, -bound1, bound1)   # (out, in)
    b1 = jax.random.uniform(k2, (10,), jnp.float32, -bound1, bound1)
    bound2 = 1.0 / jnp.sqrt(10.0)
    w2 = jax.random.uniform(k3, (2, 10), jnp.float32, -bound2, bound2)
    b2 = jax.random.uniform(k4, (2,), jnp.float32, -bound2, bound2)
    return w1, b1, w2, b2


if __name__ == "__main__":
    key = jax.random.PRNGKey(0)
    k_params, k_x = jax.random.split(key)
    w1, b1, w2, b2 = init_params(k_params)

    def ref_forward(x):
        xf = x.astype(jnp.float32)
        return jnp.maximum(xf @ w1.T + b1[None, :], 0.0) @ w2.T + b2[None, :]

    # 1) Small batch (B=8): plain-jnp fallback path (one fused XLA op).
    x_small = jax.random.normal(k_x, (8, 2), jnp.float32)
    out_small = jax.block_until_ready(simple_nn_forward(x_small, w1, b1, w2, b2))
    assert out_small.shape == (8, 2)
    assert jnp.allclose(out_small, ref_forward(x_small), atol=1e-5, rtol=1e-5)

    # 2) Pallas path, f32: B=4096 -> tb=2048, grid=(2,) (both TCs on v7x).
    x_big = jax.random.normal(k_x, (4096, 2), jnp.float32)
    out_big = jax.block_until_ready(simple_nn_forward(x_big, w1, b1, w2, b2))
    assert out_big.shape == (4096, 2)
    assert jnp.allclose(out_big, ref_forward(x_big), atol=1e-5, rtol=1e-5)

    # 3) Pallas path, ragged batch (exercises boundary-block masking, no padding
    #    buffers on the wrapper side).
    x_rag = jax.random.normal(k_x, (777, 2), jnp.float32)
    out_rag = jax.block_until_ready(
        simple_nn_forward(x_rag, w1, b1, w2, b2, min_pallas_batch=0))
    assert out_rag.shape == (777, 2)
    assert jnp.allclose(out_rag, ref_forward(x_rag), atol=1e-5, rtol=1e-5)

    # 4) bf16 activations through the Pallas path (f32 accumulation inside);
    #    halves HBM bytes for this memory-bound kernel.
    x_bf = x_big.astype(jnp.bfloat16)
    out_bf = jax.block_until_ready(simple_nn_forward(x_bf, w1, b1, w2, b2))
    assert out_bf.shape == (4096, 2) and out_bf.dtype == jnp.bfloat16
    ref_bf = ref_forward(x_bf.astype(jnp.float32))
    assert jnp.allclose(out_bf.astype(jnp.float32), ref_bf, atol=5e-2, rtol=5e-2)

    print("KERNEL_OK")
</pallas_src>

<mosaic_0001>
module attributes {stable_mosaic.version = 11 : i64} {
  func.func @_mlp_kernel(%arg0: i32, %arg1: memref<2x2048xf32, #tpu.memory_space<vmem>>, %arg2: memref<10x2xf32, #tpu.memory_space<vmem>>, %arg3: memref<10x1xf32, #tpu.memory_space<vmem>>, %arg4: memref<2x10xf32, #tpu.memory_space<vmem>>, %arg5: memref<2x1xf32, #tpu.memory_space<vmem>>, %arg6: memref<2x2048xf32, #tpu.memory_space<vmem>>) attributes {dimension_semantics = [#tpu.dimension_semantics<parallel>], iteration_bounds = array<i64: 2>, scalar_prefetch = 0 : i64, scratch_operands = 0 : i64, tpu.core_type = #tpu.core_type<tc>, window_params = [{transform_indices = @transform_0, window_bounds = array<i64: 2, 2048>}, {pipeline_mode = #tpu.pipeline_mode<synchronous>, transform_indices = @transform_1, window_bounds = array<i64: 10, 2>}, {pipeline_mode = #tpu.pipeline_mode<synchronous>, transform_indices = @transform_2, window_bounds = array<i64: 10, 1>}, {pipeline_mode = #tpu.pipeline_mode<synchronous>, transform_indices = @transform_3, window_bounds = array<i64: 2, 10>}, {pipeline_mode = #tpu.pipeline_mode<synchronous>, transform_indices = @transform_4, window_bounds = array<i64: 2, 1>}, {transform_indices = @transform_5, window_bounds = array<i64: 2, 2048>}]} {
    %c0 = arith.constant 0 : index
    %c0_0 = arith.constant 0 : index
    %0 = vector.load %arg1[%c0, %c0_0] : memref<2x2048xf32, #tpu.memory_space<vmem>>, vector<2x2048xf32>
    %c0_1 = arith.constant 0 : index
    %c0_2 = arith.constant 0 : index
    %1 = vector.load %arg2[%c0_1, %c0_2] : memref<10x2xf32, #tpu.memory_space<vmem>>, vector<10x2xf32>
    %c0_3 = arith.constant 0 : index
    %c0_4 = arith.constant 0 : index
    %2 = vector.load %arg3[%c0_3, %c0_4] : memref<10x1xf32, #tpu.memory_space<vmem>>, vector<10x1xf32>
    %c0_5 = arith.constant 0 : index
    %c0_6 = arith.constant 0 : index
    %3 = vector.load %arg4[%c0_5, %c0_6] : memref<2x10xf32, #tpu.memory_space<vmem>>, vector<2x10xf32>
    %c0_7 = arith.constant 0 : index
    %c0_8 = arith.constant 0 : index
    %4 = vector.load %arg5[%c0_7, %c0_8] : memref<2x1xf32, #tpu.memory_space<vmem>>, vector<2x1xf32>
    %5 = vector.extract_strided_slice %1 {offsets = [0, 0], sizes = [10, 1], strides = [1, 1]} : vector<10x2xf32> to vector<10x1xf32>
    %6 = vector.extract_strided_slice %0 {offsets = [0, 0], sizes = [1, 2048], strides = [1, 1]} : vector<2x2048xf32> to vector<1x2048xf32>
    %7 = vector.broadcast %5 : vector<10x1xf32> to vector<10x2048xf32>
    %8 = vector.broadcast %6 : vector<1x2048xf32> to vector<10x2048xf32>
    %9 = arith.mulf %7, %8 : vector<10x2048xf32>
    %10 = vector.broadcast %2 : vector<10x1xf32> to vector<10x2048xf32>
    %11 = arith.addf %10, %9 : vector<10x2048xf32>
    %12 = vector.extract_strided_slice %1 {offsets = [0, 1], sizes = [10, 1], strides = [1, 1]} : vector<10x2xf32> to vector<10x1xf32>
    %13 = vector.extract_strided_slice %0 {offsets = [1, 0], sizes = [1, 2048], strides = [1, 1]} : vector<2x2048xf32> to vector<1x2048xf32>
    %14 = vector.broadcast %12 : vector<10x1xf32> to vector<10x2048xf32>
    %15 = vector.broadcast %13 : vector<1x2048xf32> to vector<10x2048xf32>
    %16 = arith.mulf %14, %15 : vector<10x2048xf32>
    %17 = arith.addf %11, %16 : vector<10x2048xf32>
    %cst = arith.constant 0.000000e+00 : f32
    %18 = vector.broadcast %cst : f32 to vector<10x2048xf32>
    %19 = arith.maximumf %17, %18 : vector<10x2048xf32>
    %20 = vector.extract_strided_slice %3 {offsets = [0, 0], sizes = [2, 1], strides = [1, 1]} : vector<2x10xf32> to vector<2x1xf32>
    %21 = vector.extract_strided_slice %19 {offsets = [0, 0], sizes = [1, 2048], strides = [1, 1]} : vector<10x2048xf32> to vector<1x2048xf32>
    %22 = vector.broadcast %20 : vector<2x1xf32> to vector<2x2048xf32>
    %23 = vector.broadcast %21 : vector<1x2048xf32> to vector<2x2048xf32>
    %24 = arith.mulf %22, %23 : vector<2x2048xf32>
    %25 = vector.broadcast %4 : vector<2x1xf32> to vector<2x2048xf32>
    %26 = arith.addf %25, %24 : vector<2x2048xf32>
    %27 = vector.extract_strided_slice %3 {offsets = [0, 1], sizes = [2, 1], strides = [1, 1]} : vector<2x10xf32> to vector<2x1xf32>
    %28 = vector.extract_strided_slice %19 {offsets = [1, 0], sizes = [1, 2048], strides = [1, 1]} : vector<10x2048xf32> to vector<1x2048xf32>
    %29 = vector.broadcast %27 : vector<2x1xf32> to vector<2x2048xf32>
    %30 = vector.broadcast %28 : vector<1x2048xf32> to vector<2x2048xf32>
    %31 = arith.mulf %29, %30 : vector<2x2048xf32>
    %32 = vector.extract_strided_slice %3 {offsets = [0, 2], sizes = [2, 1], strides = [1, 1]} : vector<2x10xf32> to vector<2x1xf32>
    %33 = vector.extract_strided_slice %19 {offsets = [2, 0], sizes = [1, 2048], strides = [1, 1]} : vector<10x2048xf32> to vector<1x2048xf32>
    %34 = vector.broadcast %32 : vector<2x1xf32> to vector<2x2048xf32>
    %35 = vector.broadcast %33 : vector<1x2048xf32> to vector<2x2048xf32>
    %36 = arith.mulf %34, %35 : vector<2x2048xf32>
    %37 = arith.addf %26, %36 : vector<2x2048xf32>
    %38 = vector.extract_strided_slice %3 {offsets = [0, 3], sizes = [2, 1], strides = [1, 1]} : vector<2x10xf32> to vector<2x1xf32>
    %39 = vector.extract_strided_slice %19 {offsets = [3, 0], sizes = [1, 2048], strides = [1, 1]} : vector<10x2048xf32> to vector<1x2048xf32>
    %40 = vector.broadcast %38 : vector<2x1xf32> to vector<2x2048xf32>
    %41 = vector.broadcast %39 : vector<1x2048xf32> to vector<2x2048xf32>
    %42 = arith.mulf %40, %41 : vector<2x2048xf32>
    %43 = arith.addf %31, %42 : vector<2x2048xf32>
    %44 = vector.extract_strided_slice %3 {offsets = [0, 4], sizes = [2, 1], strides = [1, 1]} : vector<2x10xf32> to vector<2x1xf32>
    %45 = vector.extract_strided_slice %19 {offsets = [4, 0], sizes = [1, 2048], strides = [1, 1]} : vector<10x2048xf32> to vector<1x2048xf32>
    %46 = vector.broadcast %44 : vector<2x1xf32> to vector<2x2048xf32>
    %47 = vector.broadcast %45 : vector<1x2048xf32> to vector<2x2048xf32>
    %48 = arith.mulf %46, %47 : vector<2x2048xf32>
    %49 = arith.addf %37, %48 : vector<2x2048xf32>
    %50 = vector.extract_strided_slice %3 {offsets = [0, 5], sizes = [2, 1], strides = [1, 1]} : vector<2x10xf32> to vector<2x1xf32>
    %51 = vector.extract_strided_slice %19 {offsets = [5, 0], sizes = [1, 2048], strides = [1, 1]} : vector<10x2048xf32> to vector<1x2048xf32>
    %52 = vector.broadcast %50 : vector<2x1xf32> to vector<2x2048xf32>
    %53 = vector.broadcast %51 : vector<1x2048xf32> to vector<2x2048xf32>
    %54 = arith.mulf %52, %53 : vector<2x2048xf32>
    %55 = arith.addf %43, %54 : vector<2x2048xf32>
    %56 = vector.extract_strided_slice %3 {offsets = [0, 6], sizes = [2, 1], strides = [1, 1]} : vector<2x10xf32> to vector<2x1xf32>
    %57 = vector.extract_strided_slice %19 {offsets = [6, 0], sizes = [1, 2048], strides = [1, 1]} : vector<10x2048xf32> to vector<1x2048xf32>
    %58 = vector.broadcast %56 : vector<2x1xf32> to vector<2x2048xf32>
    %59 = vector.broadcast %57 : vector<1x2048xf32> to vector<2x2048xf32>
    %60 = arith.mulf %58, %59 : vector<2x2048xf32>
    %61 = arith.addf %49, %60 : vector<2x2048xf32>
    %62 = vector.extract_strided_slice %3 {offsets = [0, 7], sizes = [2, 1], strides = [1, 1]} : vector<2x10xf32> to vector<2x1xf32>
    %63 = vector.extract_strided_slice %19 {offsets = [7, 0], sizes = [1, 2048], strides = [1, 1]} : vector<10x2048xf32> to vector<1x2048xf32>
    %64 = vector.broadcast %62 : vector<2x1xf32> to vector<2x2048xf32>
    %65 = vector.broadcast %63 : vector<1x2048xf32> to vector<2x2048xf32>
    %66 = arith.mulf %64, %65 : vector<2x2048xf32>
    %67 = arith.addf %55, %66 : vector<2x2048xf32>
    %68 = vector.extract_strided_slice %3 {offsets = [0, 8], sizes = [2, 1], strides = [1, 1]} : vector<2x10xf32> to vector<2x1xf32>
    %69 = vector.extract_strided_slice %19 {offsets = [8, 0], sizes = [1, 2048], strides = [1, 1]} : vector<10x2048xf32> to vector<1x2048xf32>
    %70 = vector.broadcast %68 : vector<2x1xf32> to vector<2x2048xf32>
    %71 = vector.broadcast %69 : vector<1x2048xf32> to vector<2x2048xf32>
    %72 = arith.mulf %70, %71 : vector<2x2048xf32>
    %73 = arith.addf %61, %72 : vector<2x2048xf32>
    %74 = vector.extract_strided_slice %3 {offsets = [0, 9], sizes = [2, 1], strides = [1, 1]} : vector<2x10xf32> to vector<2x1xf32>
    %75 = vector.extract_strided_slice %19 {offsets = [9, 0], sizes = [1, 2048], strides = [1, 1]} : vector<10x2048xf32> to vector<1x2048xf32>
    %76 = vector.broadcast %74 : vector<2x1xf32> to vector<2x2048xf32>
    %77 = vector.broadcast %75 : vector<1x2048xf32> to vector<2x2048xf32>
    %78 = arith.mulf %76, %77 : vector<2x2048xf32>
    %79 = arith.addf %67, %78 : vector<2x2048xf32>
    %80 = arith.addf %73, %79 : vector<2x2048xf32>
    %c0_9 = arith.constant 0 : index
    %c0_10 = arith.constant 0 : index
    %81 = vector.load %arg6[%c0_9, %c0_10] : memref<2x2048xf32, #tpu.memory_space<vmem>>, vector<2x2048xf32>
    tpu.vector_store %arg6[%c0_9, %c0_10], %80 {strides = array<i32>} : memref<2x2048xf32, #tpu.memory_space<vmem>>, vector<2x2048xf32>,
    return
  }
  func.func @transform_0(%arg0: i32) -> (i32, i32) {
    %c0_i32 = arith.constant 0 : i32
    %c0_i32_0 = arith.constant 0 : i32
    return %c0_i32, %arg0 : i32, i32
  }
  func.func @transform_1(%arg0: i32) -> (i32, i32) {
    %c0_i32 = arith.constant 0 : i32
    %c0_i32_0 = arith.constant 0 : i32
    %c0_i32_1 = arith.constant 0 : i32
    return %c0_i32, %c0_i32_0 : i32, i32
  }
  func.func @transform_2(%arg0: i32) -> (i32, i32) {
    %c0_i32 = arith.constant 0 : i32
    %c0_i32_0 = arith.constant 0 : i32
    %c0_i32_1 = arith.constant 0 : i32
    return %c0_i32, %c0_i32_0 : i32, i32
  }
  func.func @transform_3(%arg0: i32) -> (i32, i32) {
    %c0_i32 = arith.constant 0 : i32
    %c0_i32_0 = arith.constant 0 : i32
    %c0_i32_1 = arith.constant 0 : i32
    return %c0_i32, %c0_i32_0 : i32, i32
  }
  func.func @transform_4(%arg0: i32) -> (i32, i32) {
    %c0_i32 = arith.constant 0 : i32
    %c0_i32_0 = arith.constant 0 : i32
    %c0_i32_1 = arith.constant 0 : i32
    return %c0_i32, %c0_i32_0 : i32, i32
  }
  func.func @transform_5(%arg0: i32) -> (i32, i32) {
    %c0_i32 = arith.constant 0 : i32
    %c0_i32_0 = arith.constant 0 : i32
    return %c0_i32, %arg0 : i32, i32
  }
}

</mosaic_0001>

<bundles_post_ra>
// kernel: tpu_custom_call.1
= control target key start
LH: loop header
LB: loop body
LE: loop exit
PB: predicated region body
PF: predicated region fallthrough
CT: control target
= control target key end

     0   :  { %10 = vsyncpa [#allocation3], 0  ;;  %s3551_s0 = inlined_call_operand.hbm [shape: f32[2,4096], index: 0, kind: input, shape index: {}]   ;;  %s3552_s1 = inlined_call_operand.vmem [shape: f32[10,2], index: 1, kind: input, shape index: {}]   ;;  %s3553_s2 = inlined_call_operand.vmem [shape: f32[10,1], index: 2, kind: input, shape index: {}]   ;;  %s3554_s3 = inlined_call_operand.vmem [shape: f32[2,10], index: 3, kind: input, shape index: {}]   ;;  %s3555_s4 = inlined_call_operand.vmem [shape: f32[2,1], index: 4, kind: input, shape index: {}]   ;;  %s3556_s5 = inlined_call_operand.hbm [shape: f32[2,4096], index: 5, kind: output, shape index: {}]  }
   0x1   :  { %12 = vsyncpa [#allocation3 + $0x1], 0 }
   0x2   :  { %13 = vsyncpa [#allocation4], 0 }
   0x3   :  { %15 = vsyncpa [#allocation4 + $0x1], 0  ;;  %s2145_s18 = smov 0   ;;  %s2147_s19 = smov 0  }
   0x4   :  { %s2149_s20 = smov 0   ;;  %s2151_s21 = smov 0  }
   0x5 LB: > { %s2166_s22 = sadd.s32 4294967295, %s2100_s21   ;;  %s1916_s23 = sadd.s32 4294967294, %s2100_s21   ;;  %s2100_s21 = sphi %s2151_s21, %s3884_s21   ;;  %s2096_s20 = sphi %s2149_s20, %s3883_s20   ;;  %s2092_s19 = sphi %s2147_s19, %s3882_s19   ;;  %s2088_s18 = sphi %s2145_s18, %s3881_s18  }
   0x6   : > { %s2170_s24 = sadd.s32 1, %s2100_s21   ;;  %s28_s25 = sadd.s32 1, %s2096_s20 }
   0x7   : > { %s25_s26 = ssub.s32 %s2100_s21, %s2170_s24  ;;  %p35_p0 = scmp.ne.s32.totalorder %s2096_s20, %s2092_s19 }
   0x8   : > { %p26_p1 = scmp.eq.s32.totalorder %s25_s26, 0  ;;  %p36_p2 = scmp.eq.s32.totalorder %s2100_s21, 0 }
   0x9   : > { %p41_p3 = scmp.ne.s32.totalorder %s2092_s19, %s2088_s18  ;;  %p42_p4 = scmp.eq.s32.totalorder %s2166_s22, 0 }
   0xa   : > { %s2182_s27 = scalar_select %p26_p1, %s2096_s20, %s28_s25  }
   0xb   : > { %p2184_p5 = por %p36_p2, %p35_p0  ;;  %p2188_p6 = por %p42_p4, %p41_p3 }
   0xc   : > { %p149_p7 = scmp.eq.s32.totalorder %s2166_s22, 1  ;;  %p155_p8 = scmp.eq.s32.totalorder %s1916_s23, 1 }
   0xd   : > { %p1944_p10 = scmp.lt.s32.totalorder %s2100_s21, 2  ;;  %s187_s7 = sand.u32 1, %s2096_s20  }
   0xe   : > { %p2195_p11 = por %p149_p7, %p35_p0  ;;  %p2199_p12 = por %p155_p8, %p41_p3 }
   0xf   : > { %s1930_s8 = sshll.u32 %s2100_s21, 9  ;;  %s1919_s9 = sshll.u32 %s187_s7, 5 }
  0x10   : > { %s3617_s30 = scalar_select %p2195_p11, 1, 0 }
  0x11   : > { %s3618_s6 = scalar_select %p2199_p12, 1, 0 }
  0x12   : > { %s2208_s12 = scalar_lea.hbm %s3551_s0, %s1930_s8  ;;  %s191_s13 = scalar_lea.vmem [#allocation2], %s1919_s9 }
  0x13   : > { %s199_s14 = sshll.u32 %s191_s13, 4  ;;  %p2212_p13 = pnand %p1944_p10, %p2184_p5  ;;  %s2216_s14 = int_to_ptr.vmem [resolvable:$true] %s199_s14 }
  0x14   : > { %s188_s16 = scalar_lea.sflag [#allocation3], %s187_s7  ;;  %s2004_s17 = scalar_lea.hbm %s2208_s12, 512 }
  0x15   : > { %p2005_p2 = scmp.ne.s32.totalorder %s2208_s12, %s2004_s17  ;;  %p2006_p3 = pneg %p2212_p13 }
  0x16   : > { %s2009_s26 = scalar_lea.hbm %s3551_s0, 1024  ;;  %p2010_p5 = scmp.lt.u32.totalorder %s2208_s12, %s3551_s0 }
  0x17   : > { %p2007_p4 = pnand %p2006_p3, %p2005_p2  ;;  %p2011_p8 = scmp.lt.u32.totalorder %s2009_s26, %s2004_s17 }
  0x18   : > { %p2013_p9 = scmp.lt.u32.totalorder %s2004_s17, %s2208_s12 }
  0x19   : > { %p2008_p7 = pneg %p2007_p4  ;;  %p2012_p10 = por %p2011_p8, %p2010_p5 }
  0x1b   : > { %p2014_p0 = por %p2013_p9, %p2012_p10 }
  0x1d   : > { %p2015_p1 = pnand %p2014_p0, %p2008_p7 }
  0x1f   : > { %2018 = shalt.err (!%p2015_p1)
}
  0x20   : > { %s2019_s7 = scalar_lea.vmem %s2216_s14, 512  ;;  %s2102_s9 = smov [#allocation2]  }
  0x21   : > { %p2020_p2 = scmp.ne.s32.totalorder %s2216_s14, %s2019_s7  ;;  %s2024_s10 = sshll.u32 %s2102_s9, 4  ;;  %s2025_s10 = int_to_ptr.vmem [resolvable:$false] %s2024_s10 }
  0x22   : > { %s2026_s11 = scalar_lea.vmem %s2025_s10, 1024  ;;  %p2027_p11 = scmp.lt.s32.totalorder %s2216_s14, %s2025_s10 }
  0x23   : > { %p2022_p4 = pnand %p2020_p2, %p2006_p3  ;;  %p2028_p5 = scmp.lt.s32.totalorder %s2026_s11, %s2019_s7 }
  0x25   : > { %p2023_p12 = pneg %p2022_p4  ;;  %p2029_p8 = por %p2028_p5, %p2027_p11 }
  0x27   : > { %p2030_p9 = pnand %p2029_p8, %p2023_p12 }
  0x29   : > { %2033 = shalt.err (!%p2030_p9)
}
  0x2a   : > { %1939 = dma.hbm_to_vmem [thread:$0]  (!%p2212_p13), %s2208_s12, 512, %s2216_s14, %s188_s16  }
  0x2b   : > { %p3620_p0 = scmp.lt.s32.totalorder %s2100_s21, 3  ;;  %p3621_p1 = scmp.ge.s32.totalorder %s2100_s21, 1 }
  0x2d   : > { %p205_p3 = pnand %p3621_p1, %p3620_p0 }
  0x2f   : > { %208 = sbr.rel (%p205_p3) target bundleno = 386 (0x182), region = 40 }
  0x36   : > { %s2250_s13 = sand.u32 1, %s2092_s19  }
  0x37   : > { %s1923_s17 = sshll.u32 %s2250_s13, 5  ;;  %s211_s23 = scalar_lea.sflag [#allocation3], %s2250_s13 }
  0x38   : > { %s2256_s15 = scalar_lea.vmem [#allocation2], %s1923_s17 }
  0x39   : > { %2079 = dma.done.wait (%p2188_p6), %s211_s23, 512  }
  0x3a   : > { %2081 = vsyncadd (%p2188_p6), %s211_s23, 4294966784  ;;  %v2103_v0 = vmov 1   ;;  %v2104_v1 = vmov 0   ;;  %v247_v2 = vld [vmem:[%s3552_s1] sm:$0xff]  ;;  %v248_v4 = vld [vmem:[%s3552_s1 + $0x8] sm:$0x3]  ;;  %v267_v16 = vlaneseq }
  0x3b   : > { %1990 = vset.pattern.permute.xlu1 %v2103_v0  ;;  %1989 = vset.pattern.permute.xlu0 %v2104_v1  ;;  %v249_v3 = vld [vmem:[%s3553_s2] sm:$0xff]  ;;  %v250_v5 = vld [vmem:[%s3553_s2 + $0x8] sm:$0x3]  ;;  %v2105_v8 = vmov 2   ;;  %v2106_v9 = vmov 4   ;;  %v2107_v10 = vmov 3  }
  0x3c   : > { %486 = vperm.xlu1 %1990, %v247_v2   ;;  %255 = vperm.xlu0 %1989, %v247_v2   ;;  %v251_v6 = vld [vmem:[%s3554_s3] sm:$0x3]  ;;  %v2108_v11 = vmov 7   ;;  %v2109_v12 = vmov 5   ;;  %v2110_v13 = vmov 9   ;;  %v2111_v14 = vmov 6  }
  0x3d   : > { %v252_v7 = vld [vmem:[%s3555_s4] sm:$0x3]  ;;  %v2112_v15 = vmov 8   ;;  %v2280_v17 = vshrl.u32 %v267_v16, 7  ;;  %v244_v24 = vld [vmem:[%s2256_s15 + $0x8] sm:$0xff]  ;;  %v2308_v29 = vld [vmem:[%s2256_s15 + $0x10] sm:$0xff] }
  0x3e   : > { %v243_v22 = vld [vmem:[%s2256_s15] sm:$0xff]  ;;  %v2315_v34 = vld [vmem:[%s2256_s15 + $0x18] sm:$0xff]  ;;  %s1931_s23 = sshll.u32 %s2166_s22, 9  ;;  %s240_s15 = scalar_lea.vmem [#allocation5], %s1923_s17 }
  0x3f   : > { %3622 = vst [vmem:[#allocation8_spill] sm:$0xff] %v2280_v17  ;;  %v2283_v18 = vsub.s32 0, %v2280_v17  ;;  %v2286_v19 = vsub.s32 2, %v2280_v17  ;;  %v2289_v20 = vsub.s32 4, %v2280_v17  ;;  %v2292_v21 = vsub.s32 6, %v2280_v17  ;;  %s1846_s12 = sshll.u32 %s240_s15, 4  ;;  %s3507_s25 = scalar_lea.hbm %s3556_s5, %s1931_s23  ;;  %s3509_s12 = int_to_ptr.vmem [resolvable:$true] %s1846_s12 }
  0x40   : > { %1991 = vset.pattern.permute.xlu1 %v2104_v1  ;;  %445 = vperm.xlu0 %1989, %v249_v3   ;;  %v2296_v23 = vsub.s32 1, %v2280_v17  ;;  %v2302_v27 = vsub.s32 3, %v2280_v17  ;;  %v2305_v28 = vsub.s32 5, %v2280_v17  ;;  %v2330_v42 = vsub.s32 7, %v2280_v17  ;;  %s1832_s22 = scalar_lea.sflag [#allocation4], %s2250_s13  ;;  %s2034_s17 = scalar_lea.vmem %s3509_s12, 512 }
  0x41   : > { %260 = vperm.xlu1 %1991, %v248_v4   ;;  %3623 = vst [vmem:[#allocation9_spill] sm:$0xff] %v2283_v18  ;;  %3624 = vst [vmem:[#allocation10_spill] sm:$0xff] %v2286_v19  ;;  %v270_v25 = vrot.slane %v243_v22, %v2283_v18  ;;  %v274_v26 = vrot.slane %v243_v22, %v2286_v19  ;;  %v278_v30 = vrot.slane %v243_v22, %v2289_v20  ;;  %p2035_p6 = scmp.ne.s32.totalorder %s3509_s12, %s2034_s17  ;;  %p3878_p11 = scmp.ne.s32.totalorder %s3617_s30, 0 }
  0x42   : > { %3625 = vst [vmem:[#allocation11_spill] sm:$0xff] %v2289_v20  ;;  %3626 = vst [vmem:[#allocation12_spill] sm:$0xff] %v2292_v21  ;;  %v282_v31 = vrot.slane %v243_v22, %v2292_v21  ;;  %v286_v32 = vrot.slane %v244_v24, %v2283_v18  ;;  %v290_v33 = vrot.slane %v244_v24, %v2286_v19  ;;  %s2114_s26 = smov [#allocation5]  }
  0x43   : > { %3627 = vst [vmem:[#allocation13_spill] sm:$0xff] %v2296_v23  ;;  %3628 = vst [vmem:[#allocation14_spill] sm:$0xff] %v2302_v27  ;;  %v294_v35 = vrot.slane %v244_v24, %v2289_v20  ;;  %v298_v36 = vrot.slane %v244_v24, %v2292_v21  ;;  %v302_v37 = vrot.slane %v2308_v29, %v2283_v18  ;;  %p2036_p12 = pnand %p2035_p6, %p3878_p11  ;;  %s2038_s28 = sshll.u32 %s2114_s26, 4  ;;  %s2039_s28 = int_to_ptr.vmem [resolvable:$false] %s2038_s28 }
  0x44   : > { %450 = vperm.xlu0 %1989, %v250_v5   ;;  %3629 = vst [vmem:[#allocation15_spill] sm:$0xff] %v2305_v28  ;;  %v306_v38 = vrot.slane %v2308_v29, %v2286_v19  ;;  %v310_v39 = vrot.slane %v2308_v29, %v2289_v20  ;;  %v314_v40 = vrot.slane %v2308_v29, %v2292_v21  ;;  %3630 = vst [vmem:[#allocation16_spill] sm:$0xff] %v2330_v42  ;;  %s2040_s29 = scalar_lea.vmem %s2039_s28, 1024  ;;  %p2041_p7 = scmp.lt.s32.totalorder %s3509_s12, %s2039_s28 }
  0x45   : > { %1992 = vset.pattern.permute.xlu1 %v2103_v0  ;;  %v318_v41 = vrot.slane %v2315_v34, %v2283_v18  ;;  %v322_v43 = vrot.slane %v2315_v34, %v2286_v19  ;;  %v326_v44 = vrot.slane %v2315_v34, %v2289_v20  ;;  %v330_v45 = vrot.slane %v2315_v34, %v2292_v21  ;;  %p2037_p13 = pneg %p2036_p12  ;;  %p2042_p10 = scmp.lt.s32.totalorder %s2040_s29, %s2034_s17 }
  0x46   : > { %490 = vperm.xlu1 %1992, %v248_v4   ;;  %v2339_v46 = vrot.slane %v270_v25, %v2283_v18  ;;  %v2342_v47 = vrot.slane %v274_v26, %v2283_v18  ;;  %v2345_v48 = vrot.slane %v278_v30, %v2283_v18  ;;  %v2348_v49 = vrot.slane %v282_v31, %v2283_v18 }
  0x47   : > { %v2351_v50 = vrot.slane %v286_v32, %v2283_v18  ;;  %v2354_v51 = vrot.slane %v290_v33, %v2283_v18  ;;  %v2357_v52 = vrot.slane %v294_v35, %v2283_v18  ;;  %v2360_v53 = vrot.slane %v298_v36, %v2283_v18  ;;  %p2043_p2 = por %p2042_p10, %p2041_p7 }
  0x48   : > { %735 = vperm.xlu0 %1989, %v251_v6   ;;  %v2363_v54 = vrot.slane %v302_v37, %v2283_v18  ;;  %v2366_v55 = vrot.slane %v306_v38, %v2283_v18  ;;  %v2369_v56 = vrot.slane %v310_v39, %v2283_v18  ;;  %v2372_v57 = vrot.slane %v314_v40, %v2283_v18 }
  0x49   : > { %v2375_v58 = vrot.slane %v318_v41, %v2283_v18  ;;  %v2378_v59 = vrot.slane %v322_v43, %v2283_v18  ;;  %v2381_v60 = vrot.slane %v326_v44, %v2283_v18  ;;  %v2384_v61 = vrot.slane %v330_v45, %v2283_v18  ;;  %p2044_p4 = pnand %p2043_p2, %p2037_p13 }
  0x4a   : > { %1993 = vset.pattern.permute.xlu1 %v2104_v1  ;;  %v496_v62 = vrot.slane %v243_v22, %v2296_v23  ;;  %v500_v63 = vrot.slane %v243_v22, %v2302_v27  ;;  %v508_v1 = vrot.slane %v243_v22, %v2330_v42  ;;  %v512_v2 = vrot.slane %v244_v24, %v2296_v23 }
  0x4b   : > { %820 = vperm.xlu1 %1993, %v252_v7   ;;  %v516_v3 = vrot.slane %v244_v24, %v2302_v27  ;;  %v520_v4 = vrot.slane %v244_v24, %v2305_v28  ;;  %v524_v5 = vrot.slane %v244_v24, %v2330_v42  ;;  %v532_v7 = vrot.slane %v2308_v29, %v2302_v27 }
  0x4c   : > { %1994 = vset.pattern.permute.xlu0 %v2103_v0  ;;  %v504_v0 = vrot.slane %v243_v22, %v2305_v28  ;;  %v2420_v22 = vrot.slane %v508_v1, %v2296_v23  ;;  %v2423_v24 = vrot.slane %v512_v2, %v2296_v23 }
  0x4d   : > { %840 = vperm.xlu0 %1994, %v251_v6   ;;  %v2426_v25 = vrot.slane %v516_v3, %v2296_v23  ;;  %v2429_v26 = vrot.slane %v520_v4, %v2296_v23  ;;  %v2440_v33 = vrot.slane %v532_v7, %v2296_v23 }
  0x4e   : > { %v2417_v16 = vrot.slane %v504_v0, %v2296_v23 }
  0x4f   : > { %1995 = vset.pattern.permute.xlu1 %v2105_v8  ;;  %v536_v8 = vrot.slane %v2308_v29, %v2305_v28 }
  0x50   : > { %924 = vperm.xlu1 %1995, %v251_v6  }
  0x51   : > { %1997 = vset.pattern.permute.xlu0 %v2106_v9  ;;  %v540_v9 = vrot.slane %v2308_v29, %v2330_v42 }
  0x52   : > { %1124 = vperm.xlu0 %1997, %v251_v6  }
  0x53   : > { %v2446_v35 = vrot.slane %v540_v9, %v2296_v23 }
  0x54   : > { %1996 = vset.pattern.permute.xlu1 %v2107_v10  ;;  %v544_v10 = vrot.slane %v2315_v34, %v2296_v23 }
  0x55   : > { %1024 = vperm.xlu1 %1996, %v251_v6  }
  0x56   : > { %2000 = vset.pattern.permute.xlu0 %v2108_v11  ;;  %v548_v11 = vrot.slane %v2315_v34, %v2302_v27  ;;  %v2449_v36 = vrot.slane %v544_v10, %v2296_v23 }
  0x57   : > { %1424 = vperm.xlu0 %2000, %v251_v6  }
  0x58   : > { %v2453_v38 = vrot.slane %v548_v11, %v2296_v23 }
  0x59   : > { %1998 = vset.pattern.permute.xlu1 %v2109_v12  ;;  %v552_v12 = vrot.slane %v2315_v34, %v2305_v28 }
  0x5a   : > { %1224 = vperm.xlu1 %1998, %v251_v6  }
  0x5b   : > { %2003 = vset.pattern.permute.xlu0 %v2110_v13  ;;  %v2456_v39 = vrot.slane %v552_v12, %v2296_v23 }
  0x5e   : > { %1999 = vset.pattern.permute.xlu1 %v2111_v14  ;;  %v2411_v14 = vrot.slane %v496_v62, %v2296_v23 }
  0x5f   : > { %1324 = vperm.xlu1 %1999, %v251_v6  }
  0x63   : > { %2001 = vset.pattern.permute.xlu1 %v2112_v15  ;;  %v2414_v15 = vrot.slane %v500_v63, %v2296_v23 }
  0x64   : > { %1524 = vperm.xlu1 %2001, %v251_v6  }
  0x68   : > { %2002 = vset.pattern.permute.xlu1 %v2110_v13  ;;  %v556_v13 = vrot.slane %v2315_v34, %v2330_v42  ;;  %v2443_v34 = vrot.slane %v536_v8, %v2296_v23 }
  0x69   : > { %1624 = vperm.xlu1 %2002, %v251_v6   ;;  %v528_v6 = vrot.slane %v2308_v29, %v2296_v23  ;;  %v2432_v29 = vrot.slane %v524_v5, %v2296_v23 }
  0x6a   : > { %v2459_v40 = vrot.slane %v556_v13, %v2296_v23 }
  0x6b   : > { %v2435_v30 = vrot.slane %v528_v6, %v2296_v23 }
  0xbb   : > { %v2437_v31 = vpop.permute.xlu1 %486  ;;  %v256_v32 = vpop.permute.xlu0 %255 }
  0xbc   : > { %v411_v37 = vmul.f32 %v2339_v46, %v256_v32  ;;  %v412_v41 = vmul.f32 %v2342_v47, %v256_v32  ;;  %v413_v43 = vmul.f32 %v2345_v48, %v256_v32  ;;  %v414_v44 = vmul.f32 %v2348_v49, %v256_v32 }
  0xbd   : > { %v415_v45 = vmul.f32 %v2351_v50, %v256_v32  ;;  %v416_v62 = vmul.f32 %v2354_v51, %v256_v32  ;;  %v417_v63 = vmul.f32 %v2357_v52, %v256_v32  ;;  %v418_v0 = vmul.f32 %v2360_v53, %v256_v32 }
  0xbe   : > { %v419_v1 = vmul.f32 %v2363_v54, %v256_v32  ;;  %v420_v3 = vmul.f32 %v2366_v55, %v256_v32  ;;  %v421_v4 = vmul.f32 %v2369_v56, %v256_v32  ;;  %v422_v5 = vmul.f32 %v2372_v57, %v256_v32 }
  0xbf   : > { %v446_v2 = vpop.permute.xlu0 %445  ;;  %v423_v6 = vmul.f32 %v2375_v58, %v256_v32  ;;  %v424_v8 = vmul.f32 %v2378_v59, %v256_v32  ;;  %v425_v9 = vmul.f32 %v2381_v60, %v256_v32  ;;  %v426_v10 = vmul.f32 %v2384_v61, %v256_v32 }
  0xc0   : > { %v261_v7 = vpop.permute.xlu1 %260  ;;  %v2476_v11 = vadd.f32 %v446_v2, %v411_v37  ;;  %v2479_v13 = vadd.f32 %v446_v2, %v412_v41  ;;  %v2481_v17 = vadd.f32 %v446_v2, %v413_v43  ;;  %v2483_v42 = vadd.f32 %v446_v2, %v414_v44 }
  0xc1   : > { %v427_v12 = vmul.f32 %v2339_v46, %v261_v7  ;;  %v428_v21 = vmul.f32 %v2342_v47, %v261_v7  ;;  %v429_v28 = vmul.f32 %v2345_v48, %v261_v7  ;;  %v430_v20 = vmul.f32 %v2348_v49, %v261_v7 }
  0xc2   : > { %v431_v27 = vmul.f32 %v2351_v50, %v261_v7  ;;  %v432_v32 = vmul.f32 %v2354_v51, %v261_v7  ;;  %v433_v37 = vmul.f32 %v2357_v52, %v261_v7  ;;  %v434_v46 = vmul.f32 %v2360_v53, %v261_v7 }
  0xc3   : > { %v435_v41 = vmul.f32 %v2363_v54, %v261_v7  ;;  %v436_v43 = vmul.f32 %v2366_v55, %v261_v7  ;;  %v437_v44 = vmul.f32 %v2369_v56, %v261_v7  ;;  %v438_v47 = vmul.f32 %v2372_v57, %v261_v7  ;;  %v451_v19 = vpop.permute.xlu0 %450 }
  0xc4   : > { %v439_v48 = vmul.f32 %v2375_v58, %v261_v7  ;;  %v440_v49 = vmul.f32 %v2378_v59, %v261_v7  ;;  %v441_v50 = vmul.f32 %v2381_v60, %v261_v7  ;;  %v442_v51 = vmul.f32 %v2384_v61, %v261_v7 }
  0xc5   : > { %v2500_v52 = vadd.f32 %v446_v2, %v415_v45  ;;  %v2502_v53 = vadd.f32 %v446_v2, %v416_v62  ;;  %v2504_v54 = vadd.f32 %v446_v2, %v417_v63  ;;  %v2506_v55 = vadd.f32 %v446_v2, %v418_v0 }
  0xc6   : > { %v2508_v56 = vadd.f32 %v446_v2, %v419_v1  ;;  %v2510_v57 = vadd.f32 %v446_v2, %v420_v3  ;;  %v2512_v58 = vadd.f32 %v446_v2, %v421_v4  ;;  %v2514_v23 = vadd.f32 %v446_v2, %v422_v5 }
  0xc7   : > { %v2516_v59 = vadd.f32 %v446_v2, %v423_v6  ;;  %v2518_v60 = vadd.f32 %v446_v2, %v424_v8  ;;  %v2520_v61 = vadd.f32 %v446_v2, %v425_v9  ;;  %v2522_v45 = vadd.f32 %v446_v2, %v426_v10 }
  0xc8   : > { %v2524_v62 = vadd.f32 %v451_v19, %v427_v12  ;;  %v2526_v63 = vadd.f32 %v451_v19, %v428_v21  ;;  %v2528_v0 = vadd.f32 %v451_v19, %v429_v28  ;;  %v2530_v1 = vadd.f32 %v451_v19, %v430_v20  ;;  %v491_v12 = vpop.permute.xlu1 %490 }
  0xc9   : > { %v2532_v3 = vadd.f32 %v451_v19, %v431_v27  ;;  %v2534_v4 = vadd.f32 %v451_v19, %v432_v32  ;;  %v2536_v5 = vadd.f32 %v451_v19, %v433_v37  ;;  %v2538_v6 = vadd.f32 %v451_v19, %v434_v46 }
  0xca   : > { %v2540_v7 = vadd.f32 %v451_v19, %v435_v41  ;;  %v2542_v2 = vadd.f32 %v451_v19, %v436_v43  ;;  %v2544_v8 = vadd.f32 %v451_v19, %v437_v44  ;;  %v2546_v21 = vadd.f32 %v451_v19, %v438_v47 }
  0xcb   : > { %3631 = vst [vmem:[#allocation17_spill] sm:$0xff] %v2534_v4  ;;  %3632 = vst [vmem:[#allocation18_spill] sm:$0xff] %v2536_v5  ;;  %v2548_v28 = vadd.f32 %v451_v19, %v439_v48  ;;  %v2550_v20 = vadd.f32 %v451_v19, %v440_v49  ;;  %v2552_v27 = vadd.f32 %v451_v19, %v441_v50 }
  0xcc   : > { %3633 = vst [vmem:[#allocation19_spill] sm:$0xff] %v2538_v6  ;;  %3634 = vst [vmem:[#allocation20_spill] sm:$0xff] %v2540_v7  ;;  %v2554_v9 = vadd.f32 %v451_v19, %v442_v51  ;;  %v637_v10 = vmul.f32 %v2411_v14, %v2437_v31  ;;  %v638_v32 = vmul.f32 %v2414_v15, %v2437_v31 }
  0xcd   : > { %3635 = vst [vmem:[#allocation21_spill] sm:$0xff] %v2542_v2  ;;  %3636 = vst [vmem:[#allocation22_spill] sm:$0xff] %v2544_v8  ;;  %v639_v37 = vmul.f32 %v2417_v16, %v2437_v31  ;;  %v640_v46 = vmul.f32 %v2420_v22, %v2437_v31  ;;  %v641_v41 = vmul.f32 %v2423_v24, %v2437_v31 }
  0xce   : > { %3637 = vst [vmem:[#allocation23_spill] sm:$0xff] %v2546_v21  ;;  %3638 = vst [vmem:[#allocation24_spill] sm:$0xff] %v2548_v28  ;;  %v642_v19 = vmul.f32 %v2426_v25, %v2437_v31  ;;  %v643_v43 = vmul.f32 %v2429_v26, %v2437_v31  ;;  %v644_v44 = vmul.f32 %v2432_v29, %v2437_v31 }
  0xcf   : > { %3639 = vst [vmem:[#allocation25_spill] sm:$0xff] %v2550_v20  ;;  %3640 = vst [vmem:[#allocation26_spill] sm:$0xff] %v2552_v27  ;;  %v645_v47 = vmul.f32 %v2435_v30, %v2437_v31  ;;  %v646_v48 = vmul.f32 %v2440_v33, %v2437_v31  ;;  %v647_v49 = vmul.f32 %v2443_v34, %v2437_v31 }
  0xd0   : > { %3641 = vst [vmem:[#allocation27_spill] sm:$0xff] %v2554_v9  ;;  %v648_v50 = vmul.f32 %v2446_v35, %v2437_v31  ;;  %v649_v51 = vmul.f32 %v2449_v36, %v2437_v31  ;;  %v650_v18 = vmul.f32 %v2453_v38, %v2437_v31  ;;  %v651_v9 = vmul.f32 %v2456_v39, %v2437_v31 }
  0xd1   : > { %v652_v27 = vmul.f32 %v2459_v40, %v2437_v31  ;;  %v653_v20 = vmul.f32 %v2411_v14, %v491_v12  ;;  %v654_v28 = vmul.f32 %v2414_v15, %v491_v12  ;;  %v655_v21 = vmul.f32 %v2417_v16, %v491_v12 }
  0xd2   : > { %v656_v8 = vmul.f32 %v2420_v22, %v491_v12  ;;  %v657_v2 = vmul.f32 %v2423_v24, %v491_v12  ;;  %v658_v7 = vmul.f32 %v2426_v25, %v491_v12  ;;  %v659_v6 = vmul.f32 %v2429_v26, %v491_v12 }
  0xd3   : > { %v660_v5 = vmul.f32 %v2432_v29, %v491_v12  ;;  %v661_v4 = vmul.f32 %v2435_v30, %v491_v12  ;;  %v662_v31 = vmul.f32 %v2440_v33, %v491_v12  ;;  %v663_v14 = vmul.f32 %v2443_v34, %v491_v12 }
  0xd4   : > { %v664_v15 = vmul.f32 %v2446_v35, %v491_v12  ;;  %v665_v16 = vmul.f32 %v2449_v36, %v491_v12  ;;  %v666_v22 = vmul.f32 %v2453_v38, %v491_v12  ;;  %v667_v24 = vmul.f32 %v2456_v39, %v491_v12 }
  0xd5   : > { %v668_v25 = vmul.f32 %v2459_v40, %v491_v12  ;;  %v669_v26 = vadd.f32 %v637_v10, %v2476_v11  ;;  %v670_v29 = vadd.f32 %v638_v32, %v2479_v13  ;;  %v671_v30 = vadd.f32 %v639_v37, %v2481_v17 }
  0xd6   : > { %v672_v33 = vadd.f32 %v640_v46, %v2483_v42  ;;  %v673_v34 = vadd.f32 %v641_v41, %v2500_v52  ;;  %v674_v35 = vadd.f32 %v642_v19, %v2502_v53  ;;  %v675_v36 = vadd.f32 %v643_v43, %v2504_v54 }
  0xd7   : > { %v676_v38 = vadd.f32 %v644_v44, %v2506_v55  ;;  %v677_v39 = vadd.f32 %v645_v47, %v2508_v56  ;;  %v678_v40 = vadd.f32 %v646_v48, %v2510_v57  ;;  %v679_v11 = vadd.f32 %v647_v49, %v2512_v58 }
  0xd8   : > { %v680_v13 = vadd.f32 %v648_v50, %v2514_v23  ;;  %v681_v17 = vadd.f32 %v649_v51, %v2516_v59  ;;  %v682_v42 = vadd.f32 %v650_v18, %v2518_v60  ;;  %v683_v52 = vadd.f32 %v651_v9, %v2520_v61  ;;  %v3647_v18 = vld [vmem:[#allocation17_spill] sm:$0xff]  ;;  %v3649_v59 = vld [vmem:[#allocation18_spill] sm:$0xff]  ;;  %v3651_v61 = vld [vmem:[#allocation19_spill] sm:$0xff] }
  0xd9   : > { %v684_v53 = vadd.f32 %v652_v27, %v2522_v45  ;;  %v2621_v54 = vadd.f32 %v653_v20, %v2524_v62  ;;  %v2624_v55 = vadd.f32 %v654_v28, %v2526_v63  ;;  %v2627_v56 = vadd.f32 %v655_v21, %v2528_v0  ;;  %v3653_v62 = vld [vmem:[#allocation20_spill] sm:$0xff]  ;;  %v3655_v0 = vld [vmem:[#allocation21_spill] sm:$0xff] }
  0xda   : > { %v2630_v57 = vadd.f32 %v656_v8, %v2530_v1  ;;  %v2633_v23 = vadd.f32 %v657_v2, %v2532_v3  ;;  %v2636_v58 = vadd.f32 %v658_v7, %v3647_v18  ;;  %v2639_v60 = vadd.f32 %v659_v6, %v3649_v59  ;;  %v3657_v1 = vld [vmem:[#allocation22_spill] sm:$0xff]  ;;  %v3659_v3 = vld [vmem:[#allocation23_spill] sm:$0xff]  ;;  %v3661_v7 = vld [vmem:[#allocation24_spill] sm:$0xff] }
  0xdb   : > { %3642 = vst [vmem:[#allocation28_spill] sm:$0xff] %v2621_v54  ;;  %3643 = vst [vmem:[#allocation29_spill] sm:$0xff] %v2624_v55  ;;  %v2642_v45 = vadd.f32 %v660_v5, %v3651_v61  ;;  %v2645_v63 = vadd.f32 %v661_v4, %v3653_v62  ;;  %v2648_v21 = vadd.f32 %v662_v31, %v3655_v0  ;;  %v3663_v6 = vld [vmem:[#allocation25_spill] sm:$0xff]  ;;  %v3665_v5 = vld [vmem:[#allocation26_spill] sm:$0xff]  ;;  %v2668_v10 = vmax.f32 %v669_v26, 0.0 }
  0xdc   : > { %3644 = vst [vmem:[#allocation30_spill] sm:$0xff] %v2627_v56  ;;  %3645 = vst [vmem:[#allocation31_spill] sm:$0xff] %v2630_v57  ;;  %v2651_v8 = vadd.f32 %v663_v14, %v3657_v1  ;;  %v2654_v2 = vadd.f32 %v664_v15, %v3659_v3  ;;  %v2657_v28 = vadd.f32 %v665_v16, %v3661_v7  ;;  %v3667_v4 = vld [vmem:[#allocation27_spill] sm:$0xff]  ;;  %v2670_v12 = vmax.f32 %v670_v29, 0.0 }
  0xdd   : > { %3646 = vst [vmem:[#allocation32_spill] sm:$0xff] %v2633_v23  ;;  %3648 = vst [vmem:[#allocation17_spill] sm:$0xff] %v2636_v58  ;;  %v2660_v20 = vadd.f32 %v666_v22, %v3663_v6  ;;  %v2663_v27 = vadd.f32 %v667_v24, %v3665_v5  ;;  %v2666_v9 = vadd.f32 %v668_v25, %v3667_v4  ;;  %v2672_v32 = vmax.f32 %v671_v30, 0.0 }
  0xde   : > { %3650 = vst [vmem:[#allocation18_spill] sm:$0xff] %v2639_v60  ;;  %3652 = vst [vmem:[#allocation19_spill] sm:$0xff] %v2642_v45  ;;  %v2674_v37 = vmax.f32 %v672_v33, 0.0  ;;  %v2676_v46 = vmax.f32 %v673_v34, 0.0  ;;  %v2678_v41 = vmax.f32 %v674_v35, 0.0  ;;  %v2680_v19 = vmax.f32 %v675_v36, 0.0 }
  0xdf   : > { %3654 = vst [vmem:[#allocation20_spill] sm:$0xff] %v2645_v63  ;;  %3656 = vst [vmem:[#allocation21_spill] sm:$0xff] %v2648_v21  ;;  %v2682_v43 = vmax.f32 %v676_v38, 0.0  ;;  %v2684_v44 = vmax.f32 %v677_v39, 0.0  ;;  %v2686_v47 = vmax.f32 %v678_v40, 0.0  ;;  %v2688_v48 = vmax.f32 %v679_v11, 0.0  ;;  %v821_v38 = vpop.permute.xlu1 %820 }
  0xe0   : > { %3658 = vst [vmem:[#allocation22_spill] sm:$0xff] %v2651_v8  ;;  %3660 = vst [vmem:[#allocation23_spill] sm:$0xff] %v2654_v2  ;;  %v2690_v49 = vmax.f32 %v680_v13, 0.0  ;;  %v2692_v50 = vmax.f32 %v681_v17, 0.0  ;;  %v2694_v51 = vmax.f32 %v682_v42, 0.0  ;;  %v2696_v31 = vmax.f32 %v683_v52, 0.0  ;;  %v736_v42 = vpop.permute.xlu0 %735 }
  0xe1   : > { %3662 = vst [vmem:[#allocation24_spill] sm:$0xff] %v2657_v28  ;;  %3664 = vst [vmem:[#allocation25_spill] sm:$0xff] %v2660_v20  ;;  %v2698_v14 = vmax.f32 %v684_v53, 0.0  ;;  %v3672_v13 = vld [vmem:[#allocation9_spill] sm:$0xff] }
  0xe2   : > { %3666 = vst [vmem:[#allocation26_spill] sm:$0xff] %v2663_v27  ;;  %3668 = vst [vmem:[#allocation27_spill] sm:$0xff] %v2666_v9  ;;  %v741_v17 = vrot.slane %v2668_v10, %v3672_v13  ;;  %v745_v52 = vrot.slane %v2670_v12, %v3672_v13  ;;  %v749_v53 = vrot.slane %v2672_v32, %v3672_v13 }
  0xe3   : > { %3669 = vst [vmem:[#allocation33_spill] sm:$0xff] %v2692_v50  ;;  %3670 = vst [vmem:[#allocation34_spill] sm:$0xff] %v2694_v51  ;;  %v753_v18 = vrot.slane %v2674_v37, %v3672_v13  ;;  %v757_v59 = vrot.slane %v2676_v46, %v3672_v13  ;;  %v761_v61 = vrot.slane %v2678_v41, %v3672_v13 }
  0xe4   : > { %3671 = vst [vmem:[#allocation35_spill] sm:$0xff] %v2696_v31  ;;  %v765_v62 = vrot.slane %v2680_v19, %v3672_v13  ;;  %v769_v0 = vrot.slane %v2682_v43, %v3672_v13  ;;  %v773_v1 = vrot.slane %v2684_v44, %v3672_v13  ;;  %v777_v3 = vrot.slane %v2686_v47, %v3672_v13 }
  0xe5   : > { %v781_v7 = vrot.slane %v2688_v48, %v3672_v13  ;;  %v785_v6 = vrot.slane %v2690_v49, %v3672_v13  ;;  %v789_v5 = vrot.slane %v2692_v50, %v3672_v13  ;;  %v793_v4 = vrot.slane %v2694_v51, %v3672_v13 }
  0xe6   : > { %v797_v11 = vrot.slane %v2696_v31, %v3672_v13  ;;  %v801_v40 = vrot.slane %v2698_v14, %v3672_v13  ;;  %v802_v39 = vmul.f32 %v741_v17, %v736_v42  ;;  %v803_v36 = vmul.f32 %v745_v52, %v736_v42 }
  0xe7   : > { %v804_v35 = vmul.f32 %v749_v53, %v736_v42  ;;  %v805_v34 = vmul.f32 %v753_v18, %v736_v42  ;;  %v806_v33 = vmul.f32 %v757_v59, %v736_v42  ;;  %v807_v30 = vmul.f32 %v761_v61, %v736_v42 }
  0xe8   : > { %v808_v29 = vmul.f32 %v765_v62, %v736_v42  ;;  %v809_v26 = vmul.f32 %v769_v0, %v736_v42  ;;  %v810_v25 = vmul.f32 %v773_v1, %v736_v42  ;;  %v811_v24 = vmul.f32 %v777_v3, %v736_v42 }
  0xe9   : > { %v812_v22 = vmul.f32 %v781_v7, %v736_v42  ;;  %v813_v16 = vmul.f32 %v785_v6, %v736_v42  ;;  %v814_v15 = vmul.f32 %v789_v5, %v736_v42  ;;  %v815_v9 = vmul.f32 %v793_v4, %v736_v42 }
  0xea   : > { %v816_v27 = vmul.f32 %v797_v11, %v736_v42  ;;  %v817_v20 = vmul.f32 %v801_v40, %v736_v42  ;;  %v2748_v28 = vadd.f32 %v821_v38, %v802_v39  ;;  %v2750_v2 = vadd.f32 %v821_v38, %v803_v36  ;;  %v841_v40 = vpop.permute.xlu0 %840 }
  0xeb   : > { %v2752_v17 = vadd.f32 %v821_v38, %v804_v35  ;;  %v2754_v52 = vadd.f32 %v821_v38, %v805_v34  ;;  %v2756_v53 = vadd.f32 %v821_v38, %v806_v33  ;;  %v2758_v18 = vadd.f32 %v821_v38, %v807_v30 }
  0xec   : > { %v2760_v59 = vadd.f32 %v821_v38, %v808_v29  ;;  %v2762_v61 = vadd.f32 %v821_v38, %v809_v26  ;;  %v2764_v62 = vadd.f32 %v821_v38, %v810_v25  ;;  %v2766_v11 = vadd.f32 %v821_v38, %v811_v24  ;;  %v3673_v29 = vld [vmem:[#allocation13_spill] sm:$0xff] }
  0xed   : > { %v2768_v39 = vadd.f32 %v821_v38, %v812_v22  ;;  %v2770_v36 = vadd.f32 %v821_v38, %v813_v16  ;;  %v2772_v35 = vadd.f32 %v821_v38, %v814_v15  ;;  %v2774_v34 = vadd.f32 %v821_v38, %v815_v9 }
  0xee   : > { %v2776_v33 = vadd.f32 %v821_v38, %v816_v27  ;;  %v2778_v30 = vadd.f32 %v821_v38, %v817_v20  ;;  %v846_v26 = vrot.slane %v2668_v10, %v3673_v29  ;;  %v850_v24 = vrot.slane %v2670_v12, %v3673_v29 }
  0xef   : > { %v854_v22 = vrot.slane %v2672_v32, %v3673_v29  ;;  %v858_v15 = vrot.slane %v2674_v37, %v3673_v29  ;;  %v862_v9 = vrot.slane %v2676_v46, %v3673_v29  ;;  %v866_v20 = vrot.slane %v2678_v41, %v3673_v29 }
  0xf0   : > { %v870_v27 = vrot.slane %v2680_v19, %v3673_v29  ;;  %v874_v16 = vrot.slane %v2682_v43, %v3673_v29  ;;  %v878_v25 = vrot.slane %v2684_v44, %v3673_v29  ;;  %v882_v38 = vrot.slane %v2686_v47, %v3673_v29 }
  0xf1   : > { %v886_v42 = vrot.slane %v2688_v48, %v3673_v29  ;;  %v890_v0 = vrot.slane %v2690_v49, %v3673_v29  ;;  %v894_v1 = vrot.slane %v2692_v50, %v3673_v29  ;;  %v898_v3 = vrot.slane %v2694_v51, %v3673_v29 }
  0xf2   : > { %v902_v7 = vrot.slane %v2696_v31, %v3673_v29  ;;  %v906_v6 = vrot.slane %v2698_v14, %v3673_v29  ;;  %v2812_v5 = vmul.f32 %v846_v26, %v841_v40  ;;  %v2814_v4 = vmul.f32 %v850_v24, %v841_v40  ;;  %v925_v29 = vpop.permute.xlu1 %924 }
  0xf3   : > { %v2816_v8 = vmul.f32 %v854_v22, %v841_v40  ;;  %v2818_v21 = vmul.f32 %v858_v15, %v841_v40  ;;  %v2820_v63 = vmul.f32 %v862_v9, %v841_v40  ;;  %v2822_v45 = vmul.f32 %v866_v20, %v841_v40 }
  0xf4   : > { %3674 = vst [vmem:[#allocation36_spill] sm:$0xff] %v2812_v5  ;;  %3675 = vst [vmem:[#allocation37_spill] sm:$0xff] %v2814_v4  ;;  %v2824_v60 = vmul.f32 %v870_v27, %v841_v40  ;;  %v2826_v58 = vmul.f32 %v874_v16, %v841_v40  ;;  %v2828_v23 = vmul.f32 %v878_v25, %v841_v40  ;;  %v3690_v27 = vld [vmem:[#allocation10_spill] sm:$0xff] }
  0xf5   : > { %3676 = vst [vmem:[#allocation38_spill] sm:$0xff] %v2816_v8  ;;  %3677 = vst [vmem:[#allocation39_spill] sm:$0xff] %v2818_v21  ;;  %v2830_v57 = vmul.f32 %v882_v38, %v841_v40  ;;  %v2832_v26 = vmul.f32 %v886_v42, %v841_v40  ;;  %v2834_v24 = vmul.f32 %v890_v0, %v841_v40 }
  0xf6   : > { %3678 = vst [vmem:[#allocation40_spill] sm:$0xff] %v2820_v63  ;;  %3679 = vst [vmem:[#allocation41_spill] sm:$0xff] %v2822_v45  ;;  %v2836_v22 = vmul.f32 %v894_v1, %v841_v40  ;;  %v2838_v15 = vmul.f32 %v898_v3, %v841_v40  ;;  %v2840_v9 = vmul.f32 %v902_v7, %v841_v40 }
  0xf7   : > { %3680 = vst [vmem:[#allocation42_spill] sm:$0xff] %v2824_v60  ;;  %3681 = vst [vmem:[#allocation43_spill] sm:$0xff] %v2826_v58  ;;  %v2842_v20 = vmul.f32 %v906_v6, %v841_v40  ;;  %v930_v16 = vrot.slane %v2668_v10, %v3690_v27  ;;  %v934_v25 = vrot.slane %v2670_v12, %v3690_v27 }
  0xf8   : > { %3682 = vst [vmem:[#allocation44_spill] sm:$0xff] %v2828_v23  ;;  %3683 = vst [vmem:[#allocation45_spill] sm:$0xff] %v2830_v57  ;;  %v938_v38 = vrot.slane %v2672_v32, %v3690_v27  ;;  %v942_v42 = vrot.slane %v2674_v37, %v3690_v27  ;;  %v946_v0 = vrot.slane %v2676_v46, %v3690_v27 }
  0xf9   : > { %3684 = vst [vmem:[#allocation46_spill] sm:$0xff] %v2832_v26  ;;  %3685 = vst [vmem:[#allocation47_spill] sm:$0xff] %v2834_v24  ;;  %v950_v40 = vrot.slane %v2678_v41, %v3690_v27  ;;  %v954_v1 = vrot.slane %v2680_v19, %v3690_v27  ;;  %v958_v3 = vrot.slane %v2682_v43, %v3690_v27 }
  0xfa   : > { %3686 = vst [vmem:[#allocation48_spill] sm:$0xff] %v2836_v22  ;;  %3687 = vst [vmem:[#allocation49_spill] sm:$0xff] %v2838_v15  ;;  %v962_v7 = vrot.slane %v2684_v44, %v3690_v27  ;;  %v966_v6 = vrot.slane %v2686_v47, %v3690_v27  ;;  %v970_v56 = vrot.slane %v2688_v48, %v3690_v27 }
  0xfb   : > { %3688 = vst [vmem:[#allocation50_spill] sm:$0xff] %v2840_v9  ;;  %3689 = vst [vmem:[#allocation51_spill] sm:$0xff] %v2842_v20  ;;  %v974_v55 = vrot.slane %v2690_v49, %v3690_v27  ;;  %v978_v54 = vrot.slane %v2692_v50, %v3690_v27  ;;  %v982_v13 = vrot.slane %v2694_v51, %v3690_v27 }
  0xfc   : > { %v986_v20 = vrot.slane %v2696_v31, %v3690_v27  ;;  %v990_v9 = vrot.slane %v2698_v14, %v3690_v27  ;;  %v991_v15 = vmul.f32 %v930_v16, %v925_v29  ;;  %v992_v22 = vmul.f32 %v934_v25, %v925_v29 }
  0xfd   : > { %v993_v24 = vmul.f32 %v938_v38, %v925_v29  ;;  %v994_v26 = vmul.f32 %v942_v42, %v925_v29  ;;  %v995_v57 = vmul.f32 %v946_v0, %v925_v29  ;;  %v996_v23 = vmul.f32 %v950_v40, %v925_v29 }
  0xfe   : > { %v997_v58 = vmul.f32 %v954_v1, %v925_v29  ;;  %v998_v60 = vmul.f32 %v958_v3, %v925_v29  ;;  %v999_v45 = vmul.f32 %v962_v7, %v925_v29  ;;  %v1000_v63 = vmul.f32 %v966_v6, %v925_v29 }
  0xff   : > { %v1001_v21 = vmul.f32 %v970_v56, %v925_v29  ;;  %v1002_v8 = vmul.f32 %v974_v55, %v925_v29  ;;  %v1003_v4 = vmul.f32 %v978_v54, %v925_v29  ;;  %v1004_v5 = vmul.f32 %v982_v13, %v925_v29 }
 0x100   : > { %v1005_v51 = vmul.f32 %v986_v20, %v925_v29  ;;  %v1006_v50 = vmul.f32 %v990_v9, %v925_v29  ;;  %v2877_v31 = vadd.f32 %v991_v15, %v2748_v28  ;;  %v2880_v27 = vadd.f32 %v992_v22, %v2750_v2 }
 0x101   : > { %v2883_v16 = vadd.f32 %v993_v24, %v2752_v17  ;;  %v2886_v25 = vadd.f32 %v994_v26, %v2754_v52  ;;  %v2889_v38 = vadd.f32 %v995_v57, %v2756_v53  ;;  %v2892_v54 = vadd.f32 %v996_v23, %v2758_v18 }
 0x102   : > { %v2895_v55 = vadd.f32 %v997_v58, %v2760_v59  ;;  %v2898_v56 = vadd.f32 %v998_v60, %v2762_v61  ;;  %v2901_v2 = vadd.f32 %v999_v45, %v2764_v62  ;;  %v2904_v28 = vadd.f32 %v1000_v63, %v2766_v11  ;;  %v3695_v63 = vld [vmem:[#allocation14_spill] sm:$0xff] }
 0x103   : > { %v2907_v13 = vadd.f32 %v1001_v21, %v2768_v39  ;;  %v2910_v57 = vadd.f32 %v1002_v8, %v2770_v36  ;;  %v2913_v23 = vadd.f32 %v1003_v4, %v2772_v35  ;;  %v2916_v58 = vadd.f32 %v1004_v5, %v2774_v34  ;;  %v1025_v21 = vpop.permute.xlu1 %1024  ;;  %v3696_v36 = vld [vmem:[#allocation33_spill] sm:$0xff]  ;;  %v3697_v34 = vld [vmem:[#allocation34_spill] sm:$0xff] }
 0x104   : > { %v2919_v60 = vadd.f32 %v1005_v51, %v2776_v33  ;;  %v2922_v45 = vadd.f32 %v1006_v50, %v2778_v30  ;;  %v1030_v17 = vrot.slane %v2668_v10, %v3695_v63  ;;  %v1034_v8 = vrot.slane %v2670_v12, %v3695_v63  ;;  %v3698_v30 = vld [vmem:[#allocation35_spill] sm:$0xff] }
 0x105   : > { %3691 = vst [vmem:[#allocation10_spill] sm:$0xff] %v2913_v23  ;;  %3692 = vst [vmem:[#allocation52_spill] sm:$0xff] %v2916_v58  ;;  %v1038_v52 = vrot.slane %v2672_v32, %v3695_v63  ;;  %v1042_v53 = vrot.slane %v2674_v37, %v3695_v63  ;;  %v1046_v51 = vrot.slane %v2676_v46, %v3695_v63  ;;  %v3699_v58 = vld [vmem:[#allocation36_spill] sm:$0xff] }
 0x106   : > { %3693 = vst [vmem:[#allocation53_spill] sm:$0xff] %v2919_v60  ;;  %3694 = vst [vmem:[#allocation54_spill] sm:$0xff] %v2922_v45  ;;  %v1050_v50 = vrot.slane %v2678_v41, %v3695_v63  ;;  %v1054_v18 = vrot.slane %v2680_v19, %v3695_v63  ;;  %v1058_v59 = vrot.slane %v2682_v43, %v3695_v63 }
 0x107   : > { %v1062_v61 = vrot.slane %v2684_v44, %v3695_v63  ;;  %v1066_v62 = vrot.slane %v2686_v47, %v3695_v63  ;;  %v1070_v11 = vrot.slane %v2688_v48, %v3695_v63  ;;  %v1074_v39 = vrot.slane %v2690_v49, %v3695_v63 }
 0x108   : > { %v1078_v35 = vrot.slane %v3696_v36, %v3695_v63  ;;  %v1082_v33 = vrot.slane %v3697_v34, %v3695_v63  ;;  %v1086_v29 = vrot.slane %v3698_v30, %v3695_v63  ;;  %v1090_v5 = vrot.slane %v2698_v14, %v3695_v63  ;;  %v3700_v63 = vld [vmem:[#allocation37_spill] sm:$0xff] }
 0x109   : > { %v1091_v4 = vmul.f32 %v1030_v17, %v1025_v21  ;;  %v1092_v26 = vmul.f32 %v1034_v8, %v1025_v21  ;;  %v1093_v24 = vmul.f32 %v1038_v52, %v1025_v21  ;;  %v1094_v22 = vmul.f32 %v1042_v53, %v1025_v21  ;;  %v3702_v8 = vld [vmem:[#allocation38_spill] sm:$0xff]  ;;  %v3704_v53 = vld [vmem:[#allocation39_spill] sm:$0xff] }
 0x10a   : > { %v1095_v15 = vmul.f32 %v1046_v51, %v1025_v21  ;;  %v1096_v9 = vmul.f32 %v1050_v50, %v1025_v21  ;;  %v1097_v20 = vmul.f32 %v1054_v18, %v1025_v21  ;;  %v1098_v42 = vmul.f32 %v1058_v59, %v1025_v21  ;;  %v3706_v50 = vld [vmem:[#allocation40_spill] sm:$0xff]  ;;  %v3708_v59 = vld [vmem:[#allocation41_spill] sm:$0xff] }
 0x10b   : > { %v1099_v0 = vmul.f32 %v1062_v61, %v1025_v21  ;;  %v1100_v40 = vmul.f32 %v1066_v62, %v1025_v21  ;;  %v1101_v1 = vmul.f32 %v1070_v11, %v1025_v21  ;;  %v1102_v3 = vmul.f32 %v1074_v39, %v1025_v21  ;;  %v3710_v62 = vld [vmem:[#allocation42_spill] sm:$0xff]  ;;  %v3714_v39 = vld [vmem:[#allocation44_spill] sm:$0xff] }
 0x10c   : > { %v1103_v7 = vmul.f32 %v1078_v35, %v1025_v21  ;;  %v1104_v6 = vmul.f32 %v1082_v33, %v1025_v21  ;;  %v1105_v45 = vmul.f32 %v1086_v29, %v1025_v21  ;;  %v1106_v60 = vmul.f32 %v1090_v5, %v1025_v21  ;;  %v3716_v33 = vld [vmem:[#allocation45_spill] sm:$0xff]  ;;  %v3718_v5 = vld [vmem:[#allocation46_spill] sm:$0xff] }
 0x10d   : > { %v2957_v23 = vadd.f32 %v1091_v4, %v3699_v58  ;;  %v2960_v17 = vadd.f32 %v1092_v26, %v3700_v63  ;;  %v2963_v52 = vadd.f32 %v1093_v24, %v3702_v8  ;;  %v2966_v51 = vadd.f32 %v1094_v22, %v3704_v53  ;;  %v3712_v58 = vld [vmem:[#allocation43_spill] sm:$0xff]  ;;  %v3722_v22 = vld [vmem:[#allocation48_spill] sm:$0xff] }
 0x10e   : > { %v2969_v18 = vadd.f32 %v1095_v15, %v3706_v50  ;;  %v2972_v61 = vadd.f32 %v1096_v9, %v3708_v59  ;;  %v2975_v21 = vadd.f32 %v1097_v20, %v3710_v62  ;;  %v2978_v11 = vadd.f32 %v1098_v42, %v3712_v58  ;;  %v3720_v26 = vld [vmem:[#allocation47_spill] sm:$0xff]  ;;  %v3724_v9 = vld [vmem:[#allocation49_spill] sm:$0xff]  ;;  %v3726_v42 = vld [vmem:[#allocation50_spill] sm:$0xff] }
 0x10f   : > { %3701 = vst [vmem:[#allocation14_spill] sm:$0xff] %v2960_v17  ;;  %3703 = vst [vmem:[#allocation33_spill] sm:$0xff] %v2963_v52  ;;  %v2981_v35 = vadd.f32 %v1099_v0, %v3714_v39  ;;  %v2984_v29 = vadd.f32 %v1100_v40, %v3716_v33  ;;  %v2987_v4 = vadd.f32 %v1101_v1, %v3718_v5  ;;  %v3728_v0 = vld [vmem:[#allocation51_spill] sm:$0xff]  ;;  %v1125_v1 = vpop.permute.xlu0 %1124 }
 0x110   : > { %3705 = vst [vmem:[#allocation34_spill] sm:$0xff] %v2966_v51  ;;  %3707 = vst [vmem:[#allocation35_spill] sm:$0xff] %v2969_v18  ;;  %v2990_v24 = vadd.f32 %v1102_v3, %v3720_v26  ;;  %v2993_v15 = vadd.f32 %v1103_v7, %v3722_v22  ;;  %v2996_v20 = vadd.f32 %v1104_v6, %v3724_v9  ;;  %v3730_v40 = vld [vmem:[#allocation11_spill] sm:$0xff] }
 0x111   : > { %3709 = vst [vmem:[#allocation36_spill] sm:$0xff] %v2972_v61  ;;  %3711 = vst [vmem:[#allocation37_spill] sm:$0xff] %v2975_v21  ;;  %v2999_v63 = vadd.f32 %v1105_v45, %v3726_v42  ;;  %v3002_v8 = vadd.f32 %v1106_v60, %v3728_v0  ;;  %v1130_v53 = vrot.slane %v2668_v10, %v3730_v40 }
 0x112   : > { %3713 = vst [vmem:[#allocation38_spill] sm:$0xff] %v2978_v11  ;;  %3715 = vst [vmem:[#allocation39_spill] sm:$0xff] %v2981_v35  ;;  %v1134_v3 = vrot.slane %v2670_v12, %v3730_v40  ;;  %v1138_v7 = vrot.slane %v2672_v32, %v3730_v40  ;;  %v1142_v6 = vrot.slane %v2674_v37, %v3730_v40 }
 0x113   : > { %3717 = vst [vmem:[#allocation40_spill] sm:$0xff] %v2984_v29  ;;  %3719 = vst [vmem:[#allocation41_spill] sm:$0xff] %v2987_v4  ;;  %v1146_v45 = vrot.slane %v2676_v46, %v3730_v40  ;;  %v1150_v60 = vrot.slane %v2678_v41, %v3730_v40  ;;  %v1154_v50 = vrot.slane %v2680_v19, %v3730_v40 }
 0x114   : > { %3721 = vst [vmem:[#allocation42_spill] sm:$0xff] %v2990_v24  ;;  %3723 = vst [vmem:[#allocation43_spill] sm:$0xff] %v2993_v15  ;;  %v1158_v59 = vrot.slane %v2682_v43, %v3730_v40  ;;  %v1162_v62 = vrot.slane %v2684_v44, %v3730_v40  ;;  %v1166_v58 = vrot.slane %v2686_v47, %v3730_v40 }
 0x115   : > { %3725 = vst [vmem:[#allocation44_spill] sm:$0xff] %v2996_v20  ;;  %3727 = vst [vmem:[#allocation45_spill] sm:$0xff] %v2999_v63  ;;  %v1170_v39 = vrot.slane %v2688_v48, %v3730_v40  ;;  %v1174_v33 = vrot.slane %v2690_v49, %v3730_v40  ;;  %v1178_v5 = vrot.slane %v3696_v36, %v3730_v40 }
 0x116   : > { %3729 = vst [vmem:[#allocation46_spill] sm:$0xff] %v3002_v8  ;;  %v1182_v26 = vrot.slane %v3697_v34, %v3730_v40  ;;  %v1186_v22 = vrot.slane %v3698_v30, %v3730_v40  ;;  %v1190_v9 = vrot.slane %v2698_v14, %v3730_v40  ;;  %v1191_v42 = vmul.f32 %v1130_v53, %v1125_v1 }
 0x117   : > { %v1192_v0 = vmul.f32 %v1134_v3, %v1125_v1  ;;  %v1193_v8 = vmul.f32 %v1138_v7, %v1125_v1  ;;  %v1194_v63 = vmul.f32 %v1142_v6, %v1125_v1  ;;  %v1195_v20 = vmul.f32 %v1146_v45, %v1125_v1 }
 0x118   : > { %v1196_v15 = vmul.f32 %v1150_v60, %v1125_v1  ;;  %v1197_v24 = vmul.f32 %v1154_v50, %v1125_v1  ;;  %v1198_v4 = vmul.f32 %v1158_v59, %v1125_v1  ;;  %v1199_v29 = vmul.f32 %v1162_v62, %v1125_v1 }
 0x119   : > { %v1200_v35 = vmul.f32 %v1166_v58, %v1125_v1  ;;  %v1201_v11 = vmul.f32 %v1170_v39, %v1125_v1  ;;  %v1202_v21 = vmul.f32 %v1174_v33, %v1125_v1  ;;  %v1203_v61 = vmul.f32 %v1178_v5, %v1125_v1 }
 0x11a   : > { %v1204_v18 = vmul.f32 %v1182_v26, %v1125_v1  ;;  %v1205_v51 = vmul.f32 %v1186_v22, %v1125_v1  ;;  %v1206_v52 = vmul.f32 %v1190_v9, %v1125_v1  ;;  %v3037_v17 = vadd.f32 %v1191_v42, %v2877_v31 }
 0x11b   : > { %v3040_v40 = vadd.f32 %v1192_v0, %v2880_v27  ;;  %v3043_v53 = vadd.f32 %v1193_v8, %v2883_v16  ;;  %v3046_v3 = vadd.f32 %v1194_v63, %v2886_v25  ;;  %v3049_v7 = vadd.f32 %v1195_v20, %v2889_v38 }
 0x11c   : > { %v3052_v6 = vadd.f32 %v1196_v15, %v2892_v54  ;;  %v3055_v1 = vadd.f32 %v1197_v24, %v2895_v55  ;;  %v3058_v31 = vadd.f32 %v1198_v4, %v2898_v56  ;;  %v3061_v27 = vadd.f32 %v1199_v29, %v2901_v2  ;;  %v3731_v54 = vld [vmem:[#allocation10_spill] sm:$0xff]  ;;  %v3733_v55 = vld [vmem:[#allocation52_spill] sm:$0xff]  ;;  %v3735_v56 = vld [vmem:[#allocation53_spill] sm:$0xff] }
 0x11d   : > { %v3064_v16 = vadd.f32 %v1200_v35, %v2904_v28  ;;  %v3067_v25 = vadd.f32 %v1201_v11, %v2907_v13  ;;  %v3070_v38 = vadd.f32 %v1202_v21, %v2910_v57  ;;  %v3073_v15 = vadd.f32 %v1203_v61, %v3731_v54  ;;  %v3737_v2 = vld [vmem:[#allocation54_spill] sm:$0xff]  ;;  %v3739_v28 = vld [vmem:[#allocation15_spill] sm:$0xff]  ;;  %v1225_v13 = vpop.permute.xlu1 %1224 }
 0x11e   : > { %v3076_v24 = vadd.f32 %v1204_v18, %v3733_v55  ;;  %v3079_v4 = vadd.f32 %v1205_v51, %v3735_v56  ;;  %v3082_v29 = vadd.f32 %v1206_v52, %v3737_v2  ;;  %v1230_v35 = vrot.slane %v2668_v10, %v3739_v28 }
 0x11f   : > { %3732 = vst [vmem:[#allocation47_spill] sm:$0xff] %v3073_v15  ;;  %v1234_v57 = vrot.slane %v2670_v12, %v3739_v28  ;;  %v1238_v61 = vrot.slane %v2672_v32, %v3739_v28  ;;  %v1242_v18 = vrot.slane %v2674_v37, %v3739_v28  ;;  %v1246_v51 = vrot.slane %v2676_v46, %v3739_v28 }
 0x120   : > { %3734 = vst [vmem:[#allocation48_spill] sm:$0xff] %v3076_v24  ;;  %3736 = vst [vmem:[#allocation49_spill] sm:$0xff] %v3079_v4  ;;  %v1250_v52 = vrot.slane %v2678_v41, %v3739_v28  ;;  %v1254_v21 = vrot.slane %v2680_v19, %v3739_v28  ;;  %v1258_v11 = vrot.slane %v2682_v43, %v3739_v28 }
 0x121   : > { %3738 = vst [vmem:[#allocation50_spill] sm:$0xff] %v3082_v29  ;;  %v1262_v20 = vrot.slane %v2684_v44, %v3739_v28  ;;  %v1266_v63 = vrot.slane %v2686_v47, %v3739_v28  ;;  %v1270_v8 = vrot.slane %v2688_v48, %v3739_v28  ;;  %v1274_v45 = vrot.slane %v2690_v49, %v3739_v28 }
 0x122   : > { %v1278_v60 = vrot.slane %v3696_v36, %v3739_v28  ;;  %v1282_v50 = vrot.slane %v3697_v34, %v3739_v28  ;;  %v1286_v59 = vrot.slane %v3698_v30, %v3739_v28  ;;  %v1290_v62 = vrot.slane %v2698_v14, %v3739_v28  ;;  %v3740_v28 = vld [vmem:[#allocation14_spill] sm:$0xff] }
 0x123   : > { %v1291_v58 = vmul.f32 %v1230_v35, %v1225_v13  ;;  %v1292_v39 = vmul.f32 %v1234_v57, %v1225_v13  ;;  %v1293_v33 = vmul.f32 %v1238_v61, %v1225_v13  ;;  %v1294_v5 = vmul.f32 %v1242_v18, %v1225_v13  ;;  %v3742_v57 = vld [vmem:[#allocation33_spill] sm:$0xff]  ;;  %v3744_v18 = vld [vmem:[#allocation34_spill] sm:$0xff] }
 0x124   : > { %v1295_v26 = vmul.f32 %v1246_v51, %v1225_v13  ;;  %v1296_v22 = vmul.f32 %v1250_v52, %v1225_v13  ;;  %v1297_v9 = vmul.f32 %v1254_v21, %v1225_v13  ;;  %v1298_v42 = vmul.f32 %v1258_v11, %v1225_v13  ;;  %v3746_v52 = vld [vmem:[#allocation35_spill] sm:$0xff]  ;;  %v3748_v11 = vld [vmem:[#allocation36_spill] sm:$0xff] }
 0x125   : > { %v1299_v0 = vmul.f32 %v1262_v20, %v1225_v13  ;;  %v1300_v54 = vmul.f32 %v1266_v63, %v1225_v13  ;;  %v1301_v55 = vmul.f32 %v1270_v8, %v1225_v13  ;;  %v1302_v56 = vmul.f32 %v1274_v45, %v1225_v13  ;;  %v3750_v63 = vld [vmem:[#allocation37_spill] sm:$0xff]  ;;  %v3754_v45 = vld [vmem:[#allocation39_spill] sm:$0xff] }
 0x126   : > { %v1303_v2 = vmul.f32 %v1278_v60, %v1225_v13  ;;  %v1304_v29 = vmul.f32 %v1282_v50, %v1225_v13  ;;  %v1305_v4 = vmul.f32 %v1286_v59, %v1225_v13  ;;  %v1306_v24 = vmul.f32 %v1290_v62, %v1225_v13  ;;  %v3756_v50 = vld [vmem:[#allocation40_spill] sm:$0xff]  ;;  %v3758_v62 = vld [vmem:[#allocation41_spill] sm:$0xff] }
 0x127   : > { %v3117_v15 = vadd.f32 %v1291_v58, %v2957_v23  ;;  %v3120_v35 = vadd.f32 %v1292_v39, %v3740_v28  ;;  %v3123_v61 = vadd.f32 %v1293_v33, %v3742_v57  ;;  %v3126_v51 = vadd.f32 %v1294_v5, %v3744_v18  ;;  %v3752_v23 = vld [vmem:[#allocation38_spill] sm:$0xff]  ;;  %v3762_v5 = vld [vmem:[#allocation43_spill] sm:$0xff] }
 0x128   : > { %v3129_v21 = vadd.f32 %v1295_v26, %v3746_v52  ;;  %v3132_v20 = vadd.f32 %v1296_v22, %v3748_v11  ;;  %v3135_v13 = vadd.f32 %v1297_v9, %v3750_v63  ;;  %v3138_v8 = vadd.f32 %v1298_v42, %v3752_v23  ;;  %v3760_v39 = vld [vmem:[#allocation42_spill] sm:$0xff]  ;;  %v3764_v22 = vld [vmem:[#allocation44_spill] sm:$0xff]  ;;  %v3766_v42 = vld [vmem:[#allocation45_spill] sm:$0xff] }
 0x129   : > { %3741 = vst [vmem:[#allocation51_spill] sm:$0xff] %v3120_v35  ;;  %3743 = vst [vmem:[#allocation11_spill] sm:$0xff] %v3123_v61  ;;  %v3141_v60 = vadd.f32 %v1299_v0, %v3754_v45  ;;  %v3144_v59 = vadd.f32 %v1300_v54, %v3756_v50  ;;  %v3147_v58 = vadd.f32 %v1301_v55, %v3758_v62  ;;  %v3768_v0 = vld [vmem:[#allocation46_spill] sm:$0xff]  ;;  %v3770_v54 = vld [vmem:[#allocation12_spill] sm:$0xff]  ;;  %v1325_v55 = vpop.permute.xlu1 %1324 }
 0x12a   : > { %3745 = vst [vmem:[#allocation10_spill] sm:$0xff] %v3126_v51  ;;  %3747 = vst [vmem:[#allocation52_spill] sm:$0xff] %v3129_v21  ;;  %v3150_v33 = vadd.f32 %v1302_v56, %v3760_v39  ;;  %v3153_v26 = vadd.f32 %v1303_v2, %v3762_v5  ;;  %v3156_v9 = vadd.f32 %v1304_v29, %v3764_v22 }
 0x12b   : > { %3749 = vst [vmem:[#allocation53_spill] sm:$0xff] %v3132_v20  ;;  %3751 = vst [vmem:[#allocation54_spill] sm:$0xff] %v3135_v13  ;;  %v3159_v28 = vadd.f32 %v1305_v4, %v3766_v42  ;;  %v3162_v57 = vadd.f32 %v1306_v24, %v3768_v0  ;;  %v1330_v18 = vrot.slane %v2668_v10, %v3770_v54 }
 0x12c   : > { %3753 = vst [vmem:[#allocation15_spill] sm:$0xff] %v3138_v8  ;;  %3755 = vst [vmem:[#allocation14_spill] sm:$0xff] %v3141_v60  ;;  %v1334_v56 = vrot.slane %v2670_v12, %v3770_v54  ;;  %v1338_v2 = vrot.slane %v2672_v32, %v3770_v54  ;;  %v1342_v29 = vrot.slane %v2674_v37, %v3770_v54 }
 0x12d   : > { %3757 = vst [vmem:[#allocation33_spill] sm:$0xff] %v3144_v59  ;;  %3759 = vst [vmem:[#allocation34_spill] sm:$0xff] %v3147_v58  ;;  %v1346_v4 = vrot.slane %v2676_v46, %v3770_v54  ;;  %v1350_v24 = vrot.slane %v2678_v41, %v3770_v54  ;;  %v1354_v52 = vrot.slane %v2680_v19, %v3770_v54 }
 0x12e   : > { %3761 = vst [vmem:[#allocation35_spill] sm:$0xff] %v3150_v33  ;;  %3763 = vst [vmem:[#allocation36_spill] sm:$0xff] %v3153_v26  ;;  %v1358_v11 = vrot.slane %v2682_v43, %v3770_v54  ;;  %v1362_v63 = vrot.slane %v2684_v44, %v3770_v54  ;;  %v1366_v23 = vrot.slane %v2686_v47, %v3770_v54 }
 0x12f   : > { %3765 = vst [vmem:[#allocation37_spill] sm:$0xff] %v3156_v9  ;;  %3767 = vst [vmem:[#allocation38_spill] sm:$0xff] %v3159_v28  ;;  %v1370_v45 = vrot.slane %v2688_v48, %v3770_v54  ;;  %v1374_v50 = vrot.slane %v2690_v49, %v3770_v54  ;;  %v1378_v62 = vrot.slane %v3696_v36, %v3770_v54 }
 0x130   : > { %3769 = vst [vmem:[#allocation39_spill] sm:$0xff] %v3162_v57  ;;  %v1382_v39 = vrot.slane %v3697_v34, %v3770_v54  ;;  %v1386_v5 = vrot.slane %v3698_v30, %v3770_v54  ;;  %v1390_v22 = vrot.slane %v2698_v14, %v3770_v54  ;;  %v1391_v42 = vmul.f32 %v1330_v18, %v1325_v55 }
 0x131   : > { %v1392_v0 = vmul.f32 %v1334_v56, %v1325_v55  ;;  %v1393_v57 = vmul.f32 %v1338_v2, %v1325_v55  ;;  %v1394_v28 = vmul.f32 %v1342_v29, %v1325_v55  ;;  %v1395_v9 = vmul.f32 %v1346_v4, %v1325_v55 }
 0x132   : > { %v1396_v26 = vmul.f32 %v1350_v24, %v1325_v55  ;;  %v1397_v33 = vmul.f32 %v1354_v52, %v1325_v55  ;;  %v1398_v58 = vmul.f32 %v1358_v11, %v1325_v55  ;;  %v1399_v59 = vmul.f32 %v1362_v63, %v1325_v55 }
 0x133   : > { %v1400_v60 = vmul.f32 %v1366_v23, %v1325_v55  ;;  %v1401_v8 = vmul.f32 %v1370_v45, %v1325_v55  ;;  %v1402_v13 = vmul.f32 %v1374_v50, %v1325_v55  ;;  %v1403_v20 = vmul.f32 %v1378_v62, %v1325_v55  ;;  %v3779_v62 = vld [vmem:[#allocation11_spill] sm:$0xff] }
 0x134   : > { %v1404_v21 = vmul.f32 %v1382_v39, %v1325_v55  ;;  %v1405_v51 = vmul.f32 %v1386_v5, %v1325_v55  ;;  %v1406_v61 = vmul.f32 %v1390_v22, %v1325_v55  ;;  %v3197_v35 = vadd.f32 %v1391_v42, %v3037_v17  ;;  %v3781_v5 = vld [vmem:[#allocation10_spill] sm:$0xff]  ;;  %v3783_v42 = vld [vmem:[#allocation52_spill] sm:$0xff] }
 0x135   : > { %v3200_v54 = vadd.f32 %v1392_v0, %v3040_v40  ;;  %v3203_v18 = vadd.f32 %v1393_v57, %v3043_v53  ;;  %v3206_v56 = vadd.f32 %v1394_v28, %v3046_v3  ;;  %v3209_v2 = vadd.f32 %v1395_v9, %v3049_v7 }
 0x136   : > { %v3212_v29 = vadd.f32 %v1396_v26, %v3052_v6  ;;  %v3215_v55 = vadd.f32 %v1397_v33, %v3055_v1  ;;  %v3218_v17 = vadd.f32 %v1398_v58, %v3058_v31  ;;  %v3221_v40 = vadd.f32 %v1399_v59, %v3061_v27  ;;  %v3771_v6 = vld [vmem:[#allocation47_spill] sm:$0xff]  ;;  %v3772_v1 = vld [vmem:[#allocation48_spill] sm:$0xff]  ;;  %v3773_v31 = vld [vmem:[#allocation49_spill] sm:$0xff] }
 0x137   : > { %v3224_v53 = vadd.f32 %v1400_v60, %v3064_v16  ;;  %v3227_v3 = vadd.f32 %v1401_v8, %v3067_v25  ;;  %v3230_v7 = vadd.f32 %v1402_v13, %v3070_v38  ;;  %v3233_v26 = vadd.f32 %v1403_v20, %v3771_v6  ;;  %v3774_v27 = vld [vmem:[#allocation50_spill] sm:$0xff]  ;;  %v3775_v16 = vld [vmem:[#allocation16_spill] sm:$0xff]  ;;  %v1425_v25 = vpop.permute.xlu0 %1424  ;;  %v3785_v6 = vld [vmem:[#allocation53_spill] sm:$0xff] }
 0x138   : > { %v3236_v33 = vadd.f32 %v1404_v21, %v3772_v1  ;;  %v3239_v58 = vadd.f32 %v1405_v51, %v3773_v31  ;;  %v3242_v59 = vadd.f32 %v1406_v61, %v3774_v27  ;;  %v1430_v60 = vrot.slane %v2668_v10, %v3775_v16  ;;  %v3787_v31 = vld [vmem:[#allocation54_spill] sm:$0xff] }
 0x139   : > { %v1434_v38 = vrot.slane %v2670_v12, %v3775_v16  ;;  %v1438_v20 = vrot.slane %v2672_v32, %v3775_v16  ;;  %v1442_v21 = vrot.slane %v2674_v37, %v3775_v16  ;;  %v1446_v51 = vrot.slane %v2676_v46, %v3775_v16 }
 0x13a   : > { %v1450_v61 = vrot.slane %v2678_v41, %v3775_v16  ;;  %v1454_v13 = vrot.slane %v2680_v19, %v3775_v16  ;;  %v1458_v10 = vrot.slane %v2682_v43, %v3775_v16  ;;  %v1462_v12 = vrot.slane %v2684_v44, %v3775_v16 }
 0x13b   : > { %v1466_v32 = vrot.slane %v2686_v47, %v3775_v16  ;;  %v1470_v37 = vrot.slane %v2688_v48, %v3775_v16  ;;  %v1474_v46 = vrot.slane %v2690_v49, %v3775_v16  ;;  %v1478_v41 = vrot.slane %v3696_v36, %v3775_v16 }
 0x13c   : > { %v1482_v19 = vrot.slane %v3697_v34, %v3775_v16  ;;  %v1486_v43 = vrot.slane %v3698_v30, %v3775_v16  ;;  %v1490_v44 = vrot.slane %v2698_v14, %v3775_v16  ;;  %v1491_v8 = vmul.f32 %v1430_v60, %v1425_v25  ;;  %v3777_v14 = vld [vmem:[#allocation51_spill] sm:$0xff]  ;;  %v3791_v60 = vld [vmem:[#allocation14_spill] sm:$0xff] }
 0x13d   : > { %v1492_v47 = vmul.f32 %v1434_v38, %v1425_v25  ;;  %v1493_v9 = vmul.f32 %v1438_v20, %v1425_v25  ;;  %v1494_v28 = vmul.f32 %v1442_v21, %v1425_v25  ;;  %v1495_v48 = vmul.f32 %v1446_v51, %v1425_v25  ;;  %v3793_v38 = vld [vmem:[#allocation33_spill] sm:$0xff]  ;;  %v3795_v21 = vld [vmem:[#allocation34_spill] sm:$0xff] }
 0x13e   : > { %v1496_v57 = vmul.f32 %v1450_v61, %v1425_v25  ;;  %v1497_v4 = vmul.f32 %v1454_v13, %v1425_v25  ;;  %v1498_v49 = vmul.f32 %v1458_v10, %v1425_v25  ;;  %v1499_v24 = vmul.f32 %v1462_v12, %v1425_v25  ;;  %v3797_v61 = vld [vmem:[#allocation35_spill] sm:$0xff]  ;;  %v3799_v10 = vld [vmem:[#allocation36_spill] sm:$0xff] }
 0x13f   : > { %v1500_v52 = vmul.f32 %v1466_v32, %v1425_v25  ;;  %v1501_v36 = vmul.f32 %v1470_v37, %v1425_v25  ;;  %v1502_v11 = vmul.f32 %v1474_v46, %v1425_v25  ;;  %v1503_v63 = vmul.f32 %v1478_v41, %v1425_v25  ;;  %v3801_v32 = vld [vmem:[#allocation37_spill] sm:$0xff]  ;;  %v3803_v46 = vld [vmem:[#allocation38_spill] sm:$0xff] }
 0x140   : > { %v1504_v34 = vmul.f32 %v1482_v19, %v1425_v25  ;;  %v1505_v23 = vmul.f32 %v1486_v43, %v1425_v25  ;;  %v1506_v45 = vmul.f32 %v1490_v44, %v1425_v25  ;;  %v3277_v30 = vadd.f32 %v1491_v8, %v3117_v15  ;;  %v3789_v15 = vld [vmem:[#allocation15_spill] sm:$0xff]  ;;  %v3807_v44 = vld [vmem:[#allocation9_spill] sm:$0xff]  ;;  %v3808_v8 = vld [vmem:[#allocation28_spill] sm:$0xff] }
 0x141   : > { %v3280_v50 = vadd.f32 %v1492_v47, %v3777_v14  ;;  %v3283_v39 = vadd.f32 %v1493_v9, %v3779_v62  ;;  %v3286_v22 = vadd.f32 %v1494_v28, %v3781_v5  ;;  %v3289_v0 = vadd.f32 %v1495_v48, %v3783_v42  ;;  %v3805_v19 = vld [vmem:[#allocation39_spill] sm:$0xff]  ;;  %v1525_v28 = vpop.permute.xlu1 %1524  ;;  %v3810_v48 = vld [vmem:[#allocation29_spill] sm:$0xff]  ;;  %v3820_v42 = vld [vmem:[#allocation18_spill] sm:$0xff] }
 0x142   : > { %3776 = vst [vmem:[#allocation40_spill] sm:$0xff] %v3277_v30  ;;  %v3292_v1 = vadd.f32 %v1496_v57, %v3785_v6  ;;  %v3295_v27 = vadd.f32 %v1497_v4, %v3787_v31  ;;  %v3298_v16 = vadd.f32 %v1498_v49, %v3789_v15  ;;  %v3301_v25 = vadd.f32 %v1499_v24, %v3791_v60  ;;  %v3812_v49 = vld [vmem:[#allocation30_spill] sm:$0xff]  ;;  %v3818_v14 = vld [vmem:[#allocation17_spill] sm:$0xff]  ;;  %v3822_v15 = vld [vmem:[#allocation19_spill] sm:$0xff] }
 0x143   : > { %3778 = vst [vmem:[#allocation41_spill] sm:$0xff] %v3280_v50  ;;  %3780 = vst [vmem:[#allocation42_spill] sm:$0xff] %v3283_v39  ;;  %v3304_v20 = vadd.f32 %v1500_v52, %v3793_v38  ;;  %v3307_v51 = vadd.f32 %v1501_v36, %v3795_v21  ;;  %v3310_v13 = vadd.f32 %v1502_v11, %v3797_v61  ;;  %v3809_v47 = vmax.f32 %v3808_v8, 0.0  ;;  %v3814_v36 = vld [vmem:[#allocation31_spill] sm:$0xff]  ;;  %v3824_v21 = vld [vmem:[#allocation20_spill] sm:$0xff] }
 0x144   : > { %3782 = vst [vmem:[#allocation43_spill] sm:$0xff] %v3286_v22  ;;  %3784 = vst [vmem:[#allocation44_spill] sm:$0xff] %v3289_v0  ;;  %v3313_v12 = vadd.f32 %v1503_v63, %v3799_v10  ;;  %v3316_v37 = vadd.f32 %v1504_v34, %v3801_v32  ;;  %v3319_v41 = vadd.f32 %v1505_v23, %v3803_v46  ;;  %v3811_v57 = vmax.f32 %v3810_v48, 0.0  ;;  %v3816_v34 = vld [vmem:[#allocation32_spill] sm:$0xff]  ;;  %v3826_v32 = vld [vmem:[#allocation21_spill] sm:$0xff] }
 0x145   : > { %3786 = vst [vmem:[#allocation45_spill] sm:$0xff] %v3292_v1  ;;  %3788 = vst [vmem:[#allocation46_spill] sm:$0xff] %v3295_v27  ;;  %v3322_v43 = vadd.f32 %v1506_v45, %v3805_v19  ;;  %v1530_v9 = vrot.slane %v3809_v47, %v3807_v44  ;;  %v3813_v24 = vmax.f32 %v3812_v49, 0.0  ;;  %v3815_v11 = vmax.f32 %v3814_v36, 0.0  ;;  %v3828_v47 = vld [vmem:[#allocation22_spill] sm:$0xff] }
 0x146   : > { %3790 = vst [vmem:[#allocation12_spill] sm:$0xff] %v3298_v16  ;;  %3792 = vst [vmem:[#allocation47_spill] sm:$0xff] %v3301_v25  ;;  %v1534_v4 = vrot.slane %v3811_v57, %v3807_v44  ;;  %v3817_v23 = vmax.f32 %v3816_v34, 0.0  ;;  %v3819_v62 = vmax.f32 %v3818_v14, 0.0  ;;  %v3821_v6 = vmax.f32 %v3820_v42, 0.0 }
 0x147   : > { %3794 = vst [vmem:[#allocation48_spill] sm:$0xff] %v3304_v20  ;;  %3796 = vst [vmem:[#allocation49_spill] sm:$0xff] %v3307_v51  ;;  %v1538_v52 = vrot.slane %v3813_v24, %v3807_v44  ;;  %v1542_v63 = vrot.slane %v3815_v11, %v3807_v44  ;;  %v3823_v60 = vmax.f32 %v3822_v15, 0.0  ;;  %v3825_v61 = vmax.f32 %v3824_v21, 0.0  ;;  %v3830_v11 = vld [vmem:[#allocation23_spill] sm:$0xff] }
 0x148   : > { %3798 = vst [vmem:[#allocation50_spill] sm:$0xff] %v3310_v13  ;;  %3800 = vst [vmem:[#allocation16_spill] sm:$0xff] %v3313_v12  ;;  %v1546_v45 = vrot.slane %v3817_v23, %v3807_v44  ;;  %v1550_v5 = vrot.slane %v3819_v62, %v3807_v44  ;;  %v1554_v31 = vrot.slane %v3821_v6, %v3807_v44  ;;  %v3827_v46 = vmax.f32 %v3826_v32, 0.0  ;;  %v3832_v6 = vld [vmem:[#allocation24_spill] sm:$0xff]  ;;  %v3836_v12 = vld [vmem:[#allocation26_spill] sm:$0xff] }
 0x149   : > { %3802 = vst [vmem:[#allocation51_spill] sm:$0xff] %v3316_v37  ;;  %3804 = vst [vmem:[#allocation11_spill] sm:$0xff] %v3319_v41  ;;  %v1558_v38 = vrot.slane %v3823_v60, %v3807_v44  ;;  %v1562_v10 = vrot.slane %v3825_v61, %v3807_v44  ;;  %v3829_v57 = vmax.f32 %v3828_v47, 0.0  ;;  %v3831_v23 = vmax.f32 %v3830_v11, 0.0  ;;  %v3834_v41 = vld [vmem:[#allocation25_spill] sm:$0xff]  ;;  %v3838_v51 = vld [vmem:[#allocation27_spill] sm:$0xff] }
 0x14a   : > { %3806 = vst [vmem:[#allocation10_spill] sm:$0xff] %v3322_v43  ;;  %v1566_v19 = vrot.slane %v3827_v46, %v3807_v44  ;;  %v3833_v43 = vmax.f32 %v3832_v6, 0.0  ;;  %v3835_v37 = vmax.f32 %v3834_v41, 0.0  ;;  %v3837_v13 = vmax.f32 %v3836_v12, 0.0 }
 0x14b   : > { %v1570_v24 = vrot.slane %v3829_v57, %v3807_v44  ;;  %v1574_v62 = vrot.slane %v3831_v23, %v3807_v44  ;;  %v3839_v20 = vmax.f32 %v3838_v51, 0.0  ;;  %v1591_v25 = vmul.f32 %v1530_v9, %v1525_v28 }
 0x14c   : > { %v1578_v60 = vrot.slane %v3833_v43, %v3807_v44  ;;  %v1582_v61 = vrot.slane %v3835_v37, %v3807_v44  ;;  %v1586_v46 = vrot.slane %v3837_v13, %v3807_v44  ;;  %v1592_v16 = vmul.f32 %v1534_v4, %v1525_v28 }
 0x14d   : > { %v1590_v57 = vrot.slane %v3839_v20, %v3807_v44  ;;  %v1593_v27 = vmul.f32 %v1538_v52, %v1525_v28  ;;  %v1594_v23 = vmul.f32 %v1542_v63, %v1525_v28  ;;  %v1595_v1 = vmul.f32 %v1546_v45, %v1525_v28  ;;  %v3852_v45 = vld [vmem:[#allocation23_spill] sm:$0xff] }
 0x14e   : > { %v1596_v0 = vmul.f32 %v1550_v5, %v1525_v28  ;;  %v1597_v22 = vmul.f32 %v1554_v31, %v1525_v28  ;;  %v1598_v43 = vmul.f32 %v1558_v38, %v1525_v28  ;;  %v1599_v39 = vmul.f32 %v1562_v10, %v1525_v28  ;;  %v3856_v38 = vld [vmem:[#allocation25_spill] sm:$0xff] }
 0x14f   : > { %v1600_v50 = vmul.f32 %v1566_v19, %v1525_v28  ;;  %v1601_v30 = vmul.f32 %v1570_v24, %v1525_v28  ;;  %v1602_v37 = vmul.f32 %v1574_v62, %v1525_v28  ;;  %v1603_v41 = vmul.f32 %v1578_v60, %v1525_v28  ;;  %v3858_v19 = vld [vmem:[#allocation26_spill] sm:$0xff] }
 0x150   : > { %v1604_v6 = vmul.f32 %v1582_v61, %v1525_v28  ;;  %v1605_v12 = vmul.f32 %v1586_v46, %v1525_v28  ;;  %v1606_v13 = vmul.f32 %v1590_v57, %v1525_v28  ;;  %v3373_v11 = vadd.f32 %v1591_v25, %v3197_v35 }
 0x151   : > { %v3376_v20 = vadd.f32 %v1592_v16, %v3200_v54  ;;  %v3379_v44 = vadd.f32 %v1593_v27, %v3203_v18  ;;  %v3382_v9 = vadd.f32 %v1594_v23, %v3206_v56  ;;  %v3385_v4 = vadd.f32 %v1595_v1, %v3209_v2 }
 0x152   : > { %v3388_v52 = vadd.f32 %v1596_v0, %v3212_v29  ;;  %v3391_v28 = vadd.f32 %v1597_v22, %v3215_v55  ;;  %v3394_v35 = vadd.f32 %v1598_v43, %v3218_v17  ;;  %v3397_v54 = vadd.f32 %v1599_v39, %v3221_v40 }
 0x153   : > { %v3400_v18 = vadd.f32 %v1600_v50, %v3224_v53  ;;  %v3403_v56 = vadd.f32 %v1601_v30, %v3227_v3  ;;  %v3406_v2 = vadd.f32 %v1602_v37, %v3230_v7  ;;  %v3409_v29 = vadd.f32 %v1603_v41, %v3233_v26  ;;  %v3840_v53 = vld [vmem:[#allocation13_spill] sm:$0xff]  ;;  %v1625_v30 = vpop.permute.xlu1 %1624 }
 0x154   : > { %v3412_v55 = vadd.f32 %v1604_v6, %v3236_v33  ;;  %v3415_v17 = vadd.f32 %v1605_v12, %v3239_v58  ;;  %v3418_v40 = vadd.f32 %v1606_v13, %v3242_v59  ;;  %v3841_v50 = vmax.f32 %v3808_v8, 0.0 }
 0x155   : > { %v3842_v7 = vmax.f32 %v3810_v48, 0.0  ;;  %v3843_v26 = vmax.f32 %v3812_v49, 0.0  ;;  %v3844_v58 = vmax.f32 %v3814_v36, 0.0  ;;  %v3845_v59 = vmax.f32 %v3816_v34, 0.0 }
 0x156   : > { %v1630_v3 = vrot.slane %v3841_v50, %v3840_v53  ;;  %v3846_v1 = vmax.f32 %v3818_v14, 0.0  ;;  %v3847_v16 = vmax.f32 %v3820_v42, 0.0  ;;  %v3848_v12 = vmax.f32 %v3822_v15, 0.0  ;;  %v3854_v42 = vld [vmem:[#allocation24_spill] sm:$0xff] }
 0x157   : > { %v1634_v39 = vrot.slane %v3842_v7, %v3840_v53  ;;  %v1638_v33 = vrot.slane %v3843_v26, %v3840_v53  ;;  %v1642_v22 = vrot.slane %v3844_v58, %v3840_v53  ;;  %v1646_v0 = vrot.slane %v3845_v59, %v3840_v53 }
 0x158   : > { %v1650_v27 = vrot.slane %v3846_v1, %v3840_v53  ;;  %v1654_v25 = vrot.slane %v3847_v16, %v3840_v53  ;;  %v1658_v41 = vrot.slane %v3848_v12, %v3840_v53  ;;  %v3849_v8 = vmax.f32 %v3824_v21, 0.0  ;;  %v3861_v12 = vld [vmem:[#allocation40_spill] sm:$0xff] }
 0x159   : > { %v3850_v49 = vmax.f32 %v3826_v32, 0.0  ;;  %v3851_v63 = vmax.f32 %v3828_v47, 0.0  ;;  %v3853_v14 = vmax.f32 %v3852_v45, 0.0  ;;  %v3855_v31 = vmax.f32 %v3854_v42, 0.0 }
 0x15a   : > { %v1662_v48 = vrot.slane %v3849_v8, %v3840_v53  ;;  %v3857_v21 = vmax.f32 %v3856_v38, 0.0  ;;  %v3859_v32 = vmax.f32 %v3858_v19, 0.0  ;;  %v3860_v47 = vmax.f32 %v3838_v51, 0.0  ;;  %v3862_v51 = vld [vmem:[#allocation41_spill] sm:$0xff]  ;;  %v3873_v38 = vld [vmem:[#allocation16_spill] sm:$0xff] }
 0x15b   : > { %v1666_v36 = vrot.slane %v3850_v49, %v3840_v53  ;;  %v1670_v34 = vrot.slane %v3851_v63, %v3840_v53  ;;  %v1674_v5 = vrot.slane %v3853_v14, %v3840_v53  ;;  %v1678_v15 = vrot.slane %v3855_v31, %v3840_v53  ;;  %v3870_v14 = vld [vmem:[#allocation48_spill] sm:$0xff]  ;;  %v3872_v31 = vld [vmem:[#allocation50_spill] sm:$0xff] }
 0x15c   : > { %v1682_v10 = vrot.slane %v3857_v21, %v3840_v53  ;;  %v1686_v24 = vrot.slane %v3859_v32, %v3840_v53  ;;  %v1690_v62 = vrot.slane %v3860_v47, %v3840_v53  ;;  %v1691_v6 = vmul.f32 %v1630_v3, %v1625_v30  ;;  %v3863_v3 = vld [vmem:[#allocation42_spill] sm:$0xff]  ;;  %v3875_v32 = vld [vmem:[#allocation11_spill] sm:$0xff] }
 0x15d   : > { %v1692_v60 = vmul.f32 %v1634_v39, %v1625_v30  ;;  %v1693_v61 = vmul.f32 %v1638_v33, %v1625_v30  ;;  %v1694_v46 = vmul.f32 %v1642_v22, %v1625_v30  ;;  %v1695_v57 = vmul.f32 %v1646_v0, %v1625_v30  ;;  %v3864_v33 = vld [vmem:[#allocation43_spill] sm:$0xff]  ;;  %v3865_v0 = vld [vmem:[#allocation44_spill] sm:$0xff]  ;;  %v3876_v47 = vld [vmem:[#allocation10_spill] sm:$0xff] }
 0x15e   : > { %v1696_v23 = vmul.f32 %v1650_v27, %v1625_v30  ;;  %v1697_v43 = vmul.f32 %v1654_v25, %v1625_v30  ;;  %v1698_v37 = vmul.f32 %v1658_v41, %v1625_v30  ;;  %v1699_v13 = vmul.f32 %v1662_v48, %v1625_v30  ;;  %v3866_v25 = vld [vmem:[#allocation45_spill] sm:$0xff]  ;;  %v3867_v48 = vld [vmem:[#allocation46_spill] sm:$0xff] }
 0x15f   : > { %v1700_v50 = vmul.f32 %v1666_v36, %v1625_v30  ;;  %v1701_v7 = vmul.f32 %v1670_v34, %v1625_v30  ;;  %v1702_v26 = vmul.f32 %v1674_v5, %v1625_v30  ;;  %v1703_v58 = vmul.f32 %v1678_v15, %v1625_v30  ;;  %v3868_v36 = vld [vmem:[#allocation12_spill] sm:$0xff]  ;;  %v3869_v34 = vld [vmem:[#allocation47_spill] sm:$0xff]  ;;  %v3871_v5 = vld [vmem:[#allocation49_spill] sm:$0xff] }
 0x160   : > { %v1704_v59 = vmul.f32 %v1682_v10, %v1625_v30  ;;  %v1705_v1 = vmul.f32 %v1686_v24, %v1625_v30  ;;  %v1706_v16 = vmul.f32 %v1690_v62, %v1625_v30  ;;  %v1707_v8 = vadd.f32 %v1691_v6, %v3861_v12  ;;  %v3874_v10 = vld [vmem:[#allocation51_spill] sm:$0xff] }
 0x161   : > { %v1708_v53 = vadd.f32 %v1692_v60, %v3862_v51  ;;  %v1709_v39 = vadd.f32 %v1693_v61, %v3863_v3  ;;  %v1710_v22 = vadd.f32 %v1694_v46, %v3864_v33  ;;  %v1711_v27 = vadd.f32 %v1695_v57, %v3865_v0 }
 0x162   : > { %v1712_v41 = vadd.f32 %v1696_v23, %v3866_v25  ;;  %v1713_v49 = vadd.f32 %v1697_v43, %v3867_v48  ;;  %v1714_v63 = vadd.f32 %v1698_v37, %v3868_v36  ;;  %v1715_v45 = vadd.f32 %v1699_v13, %v3869_v34 }
 0x163   : > { %v1716_v30 = vadd.f32 %v1700_v50, %v3870_v14  ;;  %v1717_v42 = vadd.f32 %v1701_v7, %v3871_v5  ;;  %v1718_v15 = vadd.f32 %v1702_v26, %v3872_v31  ;;  %v1719_v21 = vadd.f32 %v1703_v58, %v3873_v38 }
 0x164   : > { %v1720_v19 = vadd.f32 %v1704_v59, %v3874_v10  ;;  %v1721_v24 = vadd.f32 %v1705_v1, %v3875_v32  ;;  %v1722_v62 = vadd.f32 %v1706_v16, %v3876_v47  ;;  %v1723_v6 = vadd.f32 %v1707_v8, %v3373_v11 }
 0x165   : > { %v1724_v60 = vadd.f32 %v1708_v53, %v3376_v20  ;;  %v1725_v61 = vadd.f32 %v1709_v39, %v3379_v44  ;;  %v1726_v46 = vadd.f32 %v1710_v22, %v3382_v9  ;;  %v1727_v57 = vadd.f32 %v1711_v27, %v3385_v4 }
 0x166   : > { %v1728_v23 = vadd.f32 %v1712_v41, %v3388_v52  ;;  %v1729_v43 = vadd.f32 %v1713_v49, %v3391_v28  ;;  %v1730_v37 = vadd.f32 %v1714_v63, %v3394_v35  ;;  %v1731_v13 = vadd.f32 %v1715_v45, %v3397_v54 }
 0x167   : > { %v1732_v50 = vadd.f32 %v1716_v30, %v3400_v18  ;;  %v1733_v11 = vadd.f32 %v1717_v42, %v3403_v56  ;;  %v1734_v20 = vadd.f32 %v1718_v15, %v3406_v2  ;;  %v1735_v44 = vadd.f32 %v1719_v21, %v3409_v29  ;;  %v3877_v29 = vld [vmem:[#allocation8_spill] sm:$0xff] }
 0x168   : > { %v1736_v9 = vadd.f32 %v1720_v19, %v3412_v55  ;;  %v1737_v4 = vadd.f32 %v1721_v24, %v3415_v17  ;;  %v1738_v52 = vadd.f32 %v1722_v62, %v3418_v40  ;;  %v2113_v7 = vmov 1983009808  }
 0x169   : > { %v1758_v28 = vunpack.c.l.s4 %v2113_v7  ;;  %v1755_v35 = vcombine.low %v1723_v6, %v1724_v60  ;;  %v1756_v54 = vcombine.low %v1725_v61, %v1726_v46  ;;  %v1772_v18 = vcombine.low %v1727_v57, %v1728_v23 }
 0x16a   : > { %v1773_v58 = vcombine.low %v1729_v43, %v1730_v37  ;;  %v1789_v56 = vcombine.low %v1731_v13, %v1732_v50  ;;  %v1790_v59 = vcombine.low %v1733_v11, %v1734_v20  ;;  %v1806_v2 = vcombine.low %v1735_v44, %v1736_v9 }
 0x16b   : > { %v1759_v26 = vunpack.c.0.s8 %v1758_v28  ;;  %v1807_v1 = vcombine.low %v1737_v4, %v1738_v52 }
 0x16d   : > { %v1762_v16 = vsub.s32 %v1759_v26, %v3877_v29 }
 0x16f   : > { %v1763_v55 = vrot.slane %v1755_v35, %v1762_v16  ;;  %v1770_v12 = vrot.slane %v1756_v54, %v1762_v16  ;;  %v1780_v17 = vrot.slane %v1772_v18, %v1762_v16  ;;  %v1787_v8 = vrot.slane %v1773_v58, %v1762_v16 }
 0x170   : > { %v1797_v40 = vrot.slane %v1789_v56, %v1762_v16  ;;  %v1804_v51 = vrot.slane %v1790_v59, %v1762_v16  ;;  %v1814_v53 = vrot.slane %v1806_v2, %v1762_v16  ;;  %v1821_v3 = vrot.slane %v1807_v1, %v1762_v16 }
 0x171   : > { %v1771_v39 = vcombine.low %v1763_v55, %v1770_v12  ;;  %v1788_v33 = vcombine.low %v1780_v17, %v1787_v8 }
 0x172   : > { %v1805_v22 = vcombine.low %v1797_v40, %v1804_v51  ;;  %v1822_v0 = vcombine.low %v1814_v53, %v1821_v3 }
 0x173   : > { %1827 = vst [vmem:[%s240_s15] sm:$0xff] %v1771_v39  ;;  %1828 = vst [vmem:[%s240_s15 + $0x8] sm:$0xff] %v1788_v33 }
 0x174   : > { %1829 = vst [vmem:[%s240_s15 + $0x10] sm:$0xff] %v1805_v22  ;;  %1830 = vst [vmem:[%s240_s15 + $0x18] sm:$0xff] %v1822_v0 }
 0x175   : > { %2047 = shalt.err (!%p2044_p4)
}
 0x176   : > { %s2048_s13 = scalar_lea.hbm %s3507_s25, 512  ;;  %s2052_s9 = scalar_lea.hbm %s3556_s5, 1024 }
 0x177   : > { %p2049_p5 = scmp.ne.s32.totalorder %s3507_s25, %s2048_s13  ;;  %p2053_p0 = scmp.lt.u32.totalorder %s3507_s25, %s3556_s5 }
 0x178   : > { %p2054_p1 = scmp.lt.u32.totalorder %s2052_s9, %s2048_s13  ;;  %p2056_p6 = scmp.lt.u32.totalorder %s2048_s13, %s3507_s25 }
 0x179   : > { %p2050_p8 = pnand %p2049_p5, %p3878_p11 }
 0x17a   : > { %p2055_p3 = por %p2054_p1, %p2053_p0 }
 0x17b   : > { %p2051_p9 = pneg %p2050_p8 }
 0x17c   : > { %p2057_p12 = por %p2056_p6, %p2055_p3 }
 0x17e   : > { %p2058_p13 = pnand %p2057_p12, %p2051_p9 }
 0x180   : > { %2061 = shalt.err (!%p2058_p13)
}
 0x181   : > { %1934 = dma.vmem_to_hbm [thread:$0]  (%p3878_p11), %s3509_s12, 512, %s3507_s25, %s1832_s22  }
 0x182 PF: > { %s1858_s23 = sand.u32 1, %s2088_s18   ;;  %p3879_p7 = scmp.ne.s32.totalorder %s3618_s6, 0 }
 0x183   : > { %p3880_p10 = scmp.ge.s32.totalorder %s2100_s21, 2  ;;  %s1859_s15 = scalar_lea.sflag [#allocation4], %s1858_s23 }
 0x185   : > { %p1941_p2 = pnand %p3880_p10, %p3879_p7 }
 0x187   : > { %2083 = dma.done.wait (!%p1941_p2), %s1859_s15, 512  }
 0x188   : > { %2085 = vsyncadd (!%p1941_p2), %s1859_s15, 4294966784  ;;  %p18_p4 = scmp.ge.s32.totalorder %s2170_s24, 4   ;;  %s3881_s18 = smov %s2092_s19 }
 0x189   : > { %s3882_s19 = smov %s2096_s20  ;;  %s3883_s20 = smov %s2182_s27 }
 0x18a   : > { %s3884_s21 = smov %s2170_s24  ;;  %20 = sbr.rel (!%p18_p4) target bundleno = 5 (0x5), region = 85 }
 0x191   :  { %1864 = vsyncpa [#allocation3], 1 }
 0x192   :  { %1866 = vsyncpa [#allocation3 + $0x1], 1 }
 0x193   :  { %1867 = vsyncpa [#allocation4], 1 }
 0x194   :  { %1869 = vsyncpa [#allocation4 + $0x1], 1 }

</bundles_post_ra>
